<compile_context>
chip_gen: v6e
topology: v6e:2x2x1
jax: 0.10.0
libtpu: 0.0.40
codegen_flags: <defaults>
</compile_context>

<pallas_src>
import math
from functools import partial

import jax
import jax.numpy as jnp
from jax.experimental import pallas as pl
from jax.experimental.pallas import tpu as pltpu

LANE = 128
EPS = 1e-5


# ----------------------------------------------------------------------------
# small helpers
# ----------------------------------------------------------------------------
def _round_up(n, m):
    return (n + m - 1) // m * m


def _dtype_bytes(dtype):
    return jnp.finfo(dtype).bits // 8


def _vmem_budget_bytes():
    """Generation-aware scoped-VMEM budget (~half of physical VMEM, capped)."""
    cap = 64 << 20                                   # conservative fallback (v7x)
    try:
        cap = int(pltpu.get_tpu_info().vmem_capacity_bytes)
    except Exception:
        pass
    return min(cap // 2, 96 << 20)                   # ~32 MiB v7x, ~64 MiB v5e/v6e


def _pick_batch_tile(B, L, pad, Cin_p, Cout_p, K, identity, comp_bytes, budget):
    """Largest batch tile whose worst-pass VMEM footprint fits the budget,
    clamped so the grid has >= 2 steps (feeds both v7x TensorCores)."""
    Lp = L + 2 * pad
    n_res = 2 if identity else 1
    # resident weights, counted double-buffered to be safe
    fixed = 2 * comp_bytes * K * (n_res * Cin_p * Cout_p + Cout_p * Cout_p)
    # per-batch-row bytes: double-buffered input slab, one shifted tap slice,
    # f32 accumulators, double-buffered activation stores, f32 pass-C output.
    per_row = (2 * Lp * Cin_p * comp_bytes
               + Lp * Cin_p * comp_bytes
               + n_res * L * Cout_p * 4
               + 2 * n_res * L * Cout_p * comp_bytes
               + 2 * L * Cout_p * 4)
    avail = max(int(budget * 0.75) - fixed, per_row)
    bt = max(1, min(B, avail // per_row))
    if B >= 2:
        bt = min(bt, -(-B // 2))                     # force nB >= 2
    return int(bt)


def _moments(y):
    """Per-channel partial (sum, sum_sq) of a (rows, C) f32 tile -> (2, C)."""
    # TODO(synk): E[x^2]-E[x]^2 in f32 cancels badly when |mean| >> std at very
    # large B*L; switch to shifted/Welford accumulation if used at scale.
    s = jnp.sum(y, axis=0, keepdims=True)
    ss = jnp.sum(y * y, axis=0, keepdims=True)
    return jnp.concatenate([s, ss], axis=0)


# ----------------------------------------------------------------------------
# Pallas kernels
# ----------------------------------------------------------------------------
def _make_conv1_kernel(B_t, L, Cin_p, Cout_p, K, with_identity):
    """conv1 (bias absorbed by BN1) [+ identity conv] + BN1 partial moments.

    K accumulating per-tap matmuls on shifted slices of the length-padded
    input slab; the residual projection reuses the same slices (and DMA).
    """

    def kernel(x_ref, w1_ref, *rest):
        if with_identity:
            wi_ref, y1_ref, m1_ref, res_ref = rest
        else:
            y1_ref, m1_ref = rest
        acc1 = jnp.zeros((B_t * L, Cout_p), jnp.float32)
        accr = jnp.zeros((B_t * L, Cout_p), jnp.float32) if with_identity else None
        for t in range(K):                                        # static, small K
            cols = x_ref[:, pl.ds(t, L), :].reshape(B_t * L, Cin_p)
            acc1 = acc1 + jnp.dot(cols, w1_ref[t],
                                  preferred_element_type=jnp.float32)
            if with_identity:
                accr = accr + jnp.dot(cols, wi_ref[t],
                                      preferred_element_type=jnp.float32)
        m1_ref[...] = _moments(acc1).reshape(1, 2, Cout_p)
        y1_ref[...] = acc1.reshape(B_t, L, Cout_p).astype(y1_ref.dtype)
        if with_identity:
            res_ref[...] = accr.reshape(B_t, L, Cout_p).astype(res_ref.dtype)

    return kernel


def _make_conv2_kernel(B_t, L, C_p, K, pad, B_real, compute_dtype, need_mask):
    """a1 = relu(scale1*conv1 + shift1) kept in registers; conv2 + BN2 moments."""

    def kernel(y1_ref, s1_ref, t1_ref, w2_ref, y2_ref, m2_ref):
        a1 = jnp.maximum(
            y1_ref[...].astype(jnp.float32) * s1_ref[...] + t1_ref[...], 0.0)
        if need_mask:
            # zero batch-padding rows so they do not pollute BN2 moments
            gb = (pl.program_id(0) * B_t
                  + jax.lax.broadcasted_iota(jnp.int32, (B_t, 1, 1), 0))
            a1 = jnp.where(gb < B_real, a1, 0.0)
        a1 = a1.astype(compute_dtype)                  # cast BEFORE padding/slices
        if pad > 0:
            z = jnp.zeros((B_t, pad, C_p), compute_dtype)
            a1 = jnp.concatenate([z, a1, z], axis=1)   # (B_t, L+2p, C_p)
        acc = jnp.zeros((B_t * L, C_p), jnp.float32)
        for t in range(K):
            cols = a1[:, t:t + L, :].reshape(B_t * L, C_p)
            acc = acc + jnp.dot(cols, w2_ref[t],
                                preferred_element_type=jnp.float32)
        m2_ref[...] = _moments(acc).reshape(1, 2, C_p)
        y2_ref[...] = acc.reshape(B_t, L, C_p).astype(y2_ref.dtype)

    return kernel


def _make_apply_kernel(L, res_off):
    """out = relu(scale2*conv2 + shift2(+identity bias) + residual)."""

    def kernel(y2_ref, res_ref, s2_ref, t2_ref, o_ref):
        if res_off == 0:
            res = res_ref[...]
        else:                                          # residual == padded input slab
            res = res_ref[:, pl.ds(res_off, L), :]
        out = (y2_ref[...].astype(jnp.float32) * s2_ref[...] + t2_ref[...]
               + res.astype(jnp.float32))
        o_ref[...] = jnp.maximum(out, 0.0).astype(o_ref.dtype)

    return kernel


# ----------------------------------------------------------------------------
# host-side (tiny) helpers between passes
# ----------------------------------------------------------------------------
def _bn_scale_shift(moments, gamma, beta, count, eps=EPS):
    """Training-mode BN (biased variance) as per-channel scale/shift."""
    tot = jnp.sum(moments, axis=0)                     # (2, C)
    mean = tot[0] / count
    var = jnp.maximum(tot[1] / count - mean * mean, 0.0)
    scale = gamma * jax.lax.rsqrt(var + eps)
    shift = beta - mean * scale
    return scale.reshape(1, -1), shift.reshape(1, -1)


def _fold_conv_weight(w, Cin_p, Cout_p, compute_dtype):
    """torch (Cout, Cin, K) -> (K, Cin_p, Cout_p): one matmul weight per tap."""
    Cout, Cin, K = w.shape
    w = jnp.transpose(w, (2, 1, 0)).astype(jnp.float32)          # (K, Cin, Cout)
    w = jnp.pad(w, ((0, 0), (0, Cin_p - Cin), (0, Cout_p - Cout)))
    return w.astype(compute_dtype)


def _pad_vec(v, n):
    return jnp.pad(v.astype(jnp.float32), (0, n - v.shape[0]))


# ----------------------------------------------------------------------------
# wrapper: PyTorch NCL in/out, params in PyTorch layout
# ----------------------------------------------------------------------------
@partial(jax.jit, static_argnames=("kernel_size", "compute_dtype"))
def conv_block_forward(x_ncl, params, kernel_size, compute_dtype=jnp.bfloat16):
    B, Cin, L = x_ncl.shape
    Cout, _, K = params["w1"].shape
    assert K == kernel_size and K % 2 == 1, "residual add requires odd kernel_size"
    pad = K // 2
    identity_flag = Cin != Cout

    Cin_p = _round_up(Cin, LANE)
    Cout_p = _round_up(Cout, LANE)
    comp_bytes = _dtype_bytes(compute_dtype)

    budget = _vmem_budget_bytes()
    B_t = _pick_batch_tile(B, L, pad, Cin_p, Cout_p, K, identity_flag,
                           comp_bytes, budget)
    nB = -(-B // B_t)
    B_pad = nB * B_t
    need_mask = B_pad != B

    cparams = pltpu.CompilerParams(
        dimension_semantics=("parallel",),             # megacore-shard batch tiles
        vmem_limit_bytes=budget,
    )
    act_in_spec = pl.BlockSpec((B_t, L + 2 * pad, Cin_p), lambda i: (i, 0, 0))
    act_spec = pl.BlockSpec((B_t, L, Cout_p), lambda i: (i, 0, 0))
    mom_spec = pl.BlockSpec((1, 2, Cout_p), lambda i: (i, 0, 0))
    vec_spec = pl.BlockSpec((1, Cout_p), lambda i: (0, 0))
    w_in_spec = pl.BlockSpec((K, Cin_p, Cout_p), lambda i: (0, 0, 0))
    w_out_spec = pl.BlockSpec((K, Cout_p, Cout_p), lambda i: (0, 0, 0))

    # NCL -> NLC, batch/length/channel zero padding, compute-dtype cast: one
    # fused XLA copy (bias-free convs keep all padding rows exactly zero).
    # TODO(synk): absorb this transpose (and the output one) into passes A/C
    # when L is a multiple of 128; at VDCNN lengths this is a minor cost.
    x = jnp.transpose(x_ncl, (0, 2, 1)).astype(compute_dtype)
    x = jnp.pad(x, ((0, B_pad - B), (pad, pad), (0, Cin_p - Cin)))

    w1 = _fold_conv_weight(params["w1"], Cin_p, Cout_p, compute_dtype)
    w2 = _fold_conv_weight(params["w2"], Cout_p, Cout_p, compute_dtype)
    g1, be1 = _pad_vec(params["g1"], Cout_p), _pad_vec(params["be1"], Cout_p)
    g2, be2 = _pad_vec(params["g2"], Cout_p), _pad_vec(params["be2"], Cout_p)

    # ---- pass A: conv1 (+ identity conv) + BN1 partial moments --------------
    in_specs = [act_in_spec, w_in_spec]
    inputs = [x, w1]
    out_shape = [jax.ShapeDtypeStruct((B_pad, L, Cout_p), compute_dtype),
                 jax.ShapeDtypeStruct((nB, 2, Cout_p), jnp.float32)]
    out_specs = [act_spec, mom_spec]
    if identity_flag:
        wi = _fold_conv_weight(params["wi"], Cin_p, Cout_p, compute_dtype)
        in_specs.append(w_in_spec)
        inputs.append(wi)
        out_shape.append(jax.ShapeDtypeStruct((B_pad, L, Cout_p), compute_dtype))
        out_specs.append(act_spec)

    outs = pl.pallas_call(
        _make_conv1_kernel(B_t, L, Cin_p, Cout_p, K, identity_flag),
        grid=(nB,),
        in_specs=in_specs,
        out_specs=out_specs,
        out_shape=out_shape,
        compiler_params=cparams,
    )(*inputs)
    if identity_flag:
        y1, m1, residual = outs
        res_off, res_spec = 0, act_spec
    else:
        y1, m1 = outs
        residual = x                     # Cin_p == Cout_p; interior sliced in pass C
        res_off, res_spec = pad, act_in_spec

    # finalize BN1 stats (conv1 bias cancels against the mean subtraction)
    scale1, shift1 = _bn_scale_shift(m1, g1, be1, B * L)

    # ---- pass B: BN1-apply + ReLU (in registers) + conv2 + BN2 moments ------
    # TODO(synk): on mem-bound v5e consider recomputing conv1 here instead of
    # streaming y1 through HBM; not worthwhile on v7x.
    y2, m2 = pl.pallas_call(
        _make_conv2_kernel(B_t, L, Cout_p, K, pad, B, compute_dtype, need_mask),
        grid=(nB,),
        in_specs=[act_spec, vec_spec, vec_spec, w_out_spec],
        out_specs=[act_spec, mom_spec],
        out_shape=[jax.ShapeDtypeStruct((B_pad, L, Cout_p), compute_dtype),
                   jax.ShapeDtypeStruct((nB, 2, Cout_p), jnp.float32)],
        compiler_params=cparams,
    )(y1, scale1, shift1, w2)

    scale2, shift2 = _bn_scale_shift(m2, g2, be2, B * L)
    if identity_flag:
        # identity-conv bias is only consumed after BN2: fold it into shift2
        shift2 = shift2 + _pad_vec(params["bi"], Cout_p).reshape(1, Cout_p)

    # ---- pass C: BN2-apply + residual add + ReLU -----------------------------
    out_nlc = pl.pallas_call(
        _make_apply_kernel(L, res_off),
        grid=(nB,),
        in_specs=[act_spec, res_spec, vec_spec, vec_spec],
        out_specs=act_spec,
        out_shape=jax.ShapeDtypeStruct((B_pad, L, Cout_p), jnp.float32),
        compiler_params=cparams,
    )(y2, residual, scale2, shift2)

    # drop batch/channel padding, NLC -> NCL (one fused XLA copy)
    return jnp.transpose(out_nlc[:B, :, :Cout], (0, 2, 1))


# ----------------------------------------------------------------------------
# pure-JAX reference (mirrors the PyTorch forward, incl. conv biases)
# ----------------------------------------------------------------------------
def reference_forward(x, params, kernel_size, eps=EPS):
    pad = kernel_size // 2
    Cin = x.shape[1]
    Cout = params["w1"].shape[0]

    def conv1d(x, w, b):
        y = jax.lax.conv_general_dilated(
            x, w, window_strides=(1,), padding=[(pad, pad)],
            dimension_numbers=("NCH", "OIH", "NCH"))
        return y + b[None, :, None]

    def bn(y, g, be):
        mean = y.mean(axis=(0, 2), keepdims=True)
        var = ((y - mean) ** 2).mean(axis=(0, 2), keepdims=True)
        return (g[None, :, None] * (y - mean) / jnp.sqrt(var + eps)
                + be[None, :, None])

    residual = x
    c1 = conv1d(x, params["w1"], params["b1"])
    a1 = jnp.maximum(bn(c1, params["g1"], params["be1"]), 0.0)
    c2 = conv1d(a1, params["w2"], params["b2"])
    if Cin != Cout:
        residual = conv1d(x, params["wi"], params["bi"])
    return jnp.maximum(bn(c2, params["g2"], params["be2"]) + residual, 0.0)


# ----------------------------------------------------------------------------
# deterministic parameter init (PyTorch-style uniform bounds, default BN affine)
# ----------------------------------------------------------------------------
def init_params(key, in_channels, out_channels, kernel_size):
    ks = jax.random.split(key, 6)
    b_in = 1.0 / math.sqrt(in_channels * kernel_size)
    b_out = 1.0 / math.sqrt(out_channels * kernel_size)
    u = lambda k, shape, b: jax.random.uniform(k, shape, jnp.float32, -b, b)
    return {
        "w1": u(ks[0], (out_channels, in_channels, kernel_size), b_in),
        "b1": u(ks[1], (out_channels,), b_in),
        "w2": u(ks[2], (out_channels, out_channels, kernel_size), b_out),
        "b2": u(ks[3], (out_channels,), b_out),
        "wi": u(ks[4], (out_channels, in_channels, kernel_size), b_in),
        "bi": u(ks[5], (out_channels,), b_in),
        "g1": jnp.ones((out_channels,), jnp.float32),
        "be1": jnp.zeros((out_channels,), jnp.float32),
        "g2": jnp.ones((out_channels,), jnp.float32),
        "be2": jnp.zeros((out_channels,), jnp.float32),
    }


if __name__ == "__main__":
    key = jax.random.PRNGKey(0)

    # Case 1: in_channels != out_channels -> identity conv on the residual
    # path; checked at f32 MXU precision against the pure-JAX reference.
    B, Cin, Cout, L, K = 2, 4, 8, 16, 3
    kx, kp, key = jax.random.split(key, 3)
    x = jax.random.normal(kx, (B, Cin, L), jnp.float32)          # PyTorch NCL input
    params = init_params(kp, Cin, Cout, K)
    out = conv_block_forward(x, params, kernel_size=K, compute_dtype=jnp.float32)
    jax.block_until_ready(out)
    ref = reference_forward(x, params, K)
    assert out.shape == ref.shape == (B, Cout, L)
    assert bool(jnp.allclose(out, ref, rtol=1e-3, atol=1e-3)), "mismatch (identity, f32)"

    # Case 2: in_channels == out_channels -> plain residual; default bf16 MXU
    # inputs + bf16 inter-pass activations (tolerance loosened accordingly).
    B2, C2, L2 = 2, 8, 16
    kx2, kp2, key = jax.random.split(key, 3)
    x2 = jax.random.normal(kx2, (B2, C2, L2), jnp.float32)
    params2 = init_params(kp2, C2, C2, K)
    out2 = conv_block_forward(x2, params2, kernel_size=K)
    jax.block_until_ready(out2)
    ref2 = reference_forward(x2, params2, K)
    assert out2.shape == ref2.shape == (B2, C2, L2)
    assert bool(jnp.allclose(out2, ref2, rtol=1e-1, atol=1e-1)), "mismatch (residual, bf16)"

    print("KERNEL_OK")
</pallas_src>

<mosaic_0001>
module attributes {stable_mosaic.version = 11 : i64} {
  func.func @kernel(%arg0: i32, %arg1: memref<1x18x128xf32, #tpu.memory_space<vmem>>, %arg2: memref<3x128x128xf32, #tpu.memory_space<vmem>>, %arg3: memref<3x128x128xf32, #tpu.memory_space<vmem>>, %arg4: memref<1x16x128xf32, #tpu.memory_space<vmem>>, %arg5: memref<1x2x128xf32, #tpu.memory_space<vmem>>, %arg6: memref<1x16x128xf32, #tpu.memory_space<vmem>>) attributes {dimension_semantics = [#tpu.dimension_semantics<parallel>], iteration_bounds = array<i64: 2>, scalar_prefetch = 0 : i64, scratch_operands = 0 : i64, tpu.core_type = #tpu.core_type<tc>, window_params = [{transform_indices = @transform_0, window_bounds = array<i64: 1, 18, 128>}, {pipeline_mode = #tpu.pipeline_mode<synchronous>, transform_indices = @transform_1, window_bounds = array<i64: 3, 128, 128>}, {pipeline_mode = #tpu.pipeline_mode<synchronous>, transform_indices = @transform_2, window_bounds = array<i64: 3, 128, 128>}, {transform_indices = @transform_3, window_bounds = array<i64: 1, 16, 128>}, {transform_indices = @transform_4, window_bounds = array<i64: 1, 2, 128>}, {transform_indices = @transform_5, window_bounds = array<i64: 1, 16, 128>}]} {
    %cst = arith.constant 0.000000e+00 : f32
    %0 = vector.broadcast %cst : f32 to vector<16x128xf32>
    %cst_0 = arith.constant 0.000000e+00 : f32
    %1 = vector.broadcast %cst_0 : f32 to vector<16x128xf32>
    %c0 = arith.constant 0 : index
    %c0_1 = arith.constant 0 : index
    %c0_2 = arith.constant 0 : index
    %2 = vector.load %arg1[%c0, %c0_1, %c0_2] : memref<1x18x128xf32, #tpu.memory_space<vmem>>, vector<1x16x128xf32>
    %3 = vector.shape_cast %2 : vector<1x16x128xf32> to vector<16x128xf32>
    %c0_3 = arith.constant 0 : index
    %c0_4 = arith.constant 0 : index
    %c0_5 = arith.constant 0 : index
    %4 = vector.load %arg2[%c0_3, %c0_4, %c0_5] : memref<3x128x128xf32, #tpu.memory_space<vmem>>, vector<1x128x128xf32>
    %5 = vector.shape_cast %4 : vector<1x128x128xf32> to vector<128x128xf32>
    %cst_6 = arith.constant dense<0.000000e+00> : vector<16x128xf32>
    %6 = tpu.matmul %3, %5, %cst_6 {dimension_numbers = #tpu.dot_dimension_numbers<[1], [0], [0], [1], [0, 0, 1, 1], [], []>} : vector<16x128xf32>, vector<128x128xf32>, vector<16x128xf32> -> vector<16x128xf32>
    %7 = arith.addf %0, %6 : vector<16x128xf32>
    %c0_7 = arith.constant 0 : index
    %c0_8 = arith.constant 0 : index
    %c0_9 = arith.constant 0 : index
    %8 = vector.load %arg3[%c0_7, %c0_8, %c0_9] : memref<3x128x128xf32, #tpu.memory_space<vmem>>, vector<1x128x128xf32>
    %9 = vector.shape_cast %8 : vector<1x128x128xf32> to vector<128x128xf32>
    %cst_10 = arith.constant dense<0.000000e+00> : vector<16x128xf32>
    %10 = tpu.matmul %3, %9, %cst_10 {dimension_numbers = #tpu.dot_dimension_numbers<[1], [0], [0], [1], [0, 0, 1, 1], [], []>} : vector<16x128xf32>, vector<128x128xf32>, vector<16x128xf32> -> vector<16x128xf32>
    %11 = arith.addf %1, %10 : vector<16x128xf32>
    %c0_11 = arith.constant 0 : index
    %c1 = arith.constant 1 : index
    %c0_12 = arith.constant 0 : index
    %12 = vector.load %arg1[%c0_11, %c1, %c0_12] : memref<1x18x128xf32, #tpu.memory_space<vmem>>, vector<1x16x128xf32>
    %13 = vector.shape_cast %12 : vector<1x16x128xf32> to vector<16x128xf32>
    %c1_13 = arith.constant 1 : index
    %c0_14 = arith.constant 0 : index
    %c0_15 = arith.constant 0 : index
    %14 = vector.load %arg2[%c1_13, %c0_14, %c0_15] : memref<3x128x128xf32, #tpu.memory_space<vmem>>, vector<1x128x128xf32>
    %15 = vector.shape_cast %14 : vector<1x128x128xf32> to vector<128x128xf32>
    %cst_16 = arith.constant dense<0.000000e+00> : vector<16x128xf32>
    %16 = tpu.matmul %13, %15, %cst_16 {dimension_numbers = #tpu.dot_dimension_numbers<[1], [0], [0], [1], [0, 0, 1, 1], [], []>} : vector<16x128xf32>, vector<128x128xf32>, vector<16x128xf32> -> vector<16x128xf32>
    %17 = arith.addf %7, %16 : vector<16x128xf32>
    %c1_17 = arith.constant 1 : index
    %c0_18 = arith.constant 0 : index
    %c0_19 = arith.constant 0 : index
    %18 = vector.load %arg3[%c1_17, %c0_18, %c0_19] : memref<3x128x128xf32, #tpu.memory_space<vmem>>, vector<1x128x128xf32>
    %19 = vector.shape_cast %18 : vector<1x128x128xf32> to vector<128x128xf32>
    %cst_20 = arith.constant dense<0.000000e+00> : vector<16x128xf32>
    %20 = tpu.matmul %13, %19, %cst_20 {dimension_numbers = #tpu.dot_dimension_numbers<[1], [0], [0], [1], [0, 0, 1, 1], [], []>} : vector<16x128xf32>, vector<128x128xf32>, vector<16x128xf32> -> vector<16x128xf32>
    %21 = arith.addf %11, %20 : vector<16x128xf32>
    %c0_21 = arith.constant 0 : index
    %c2 = arith.constant 2 : index
    %c0_22 = arith.constant 0 : index
    %22 = vector.load %arg1[%c0_21, %c2, %c0_22] : memref<1x18x128xf32, #tpu.memory_space<vmem>>, vector<1x16x128xf32>
    %23 = vector.shape_cast %22 : vector<1x16x128xf32> to vector<16x128xf32>
    %c2_23 = arith.constant 2 : index
    %c0_24 = arith.constant 0 : index
    %c0_25 = arith.constant 0 : index
    %24 = vector.load %arg2[%c2_23, %c0_24, %c0_25] : memref<3x128x128xf32, #tpu.memory_space<vmem>>, vector<1x128x128xf32>
    %25 = vector.shape_cast %24 : vector<1x128x128xf32> to vector<128x128xf32>
    %cst_26 = arith.constant dense<0.000000e+00> : vector<16x128xf32>
    %26 = tpu.matmul %23, %25, %cst_26 {dimension_numbers = #tpu.dot_dimension_numbers<[1], [0], [0], [1], [0, 0, 1, 1], [], []>} : vector<16x128xf32>, vector<128x128xf32>, vector<16x128xf32> -> vector<16x128xf32>
    %27 = arith.addf %17, %26 : vector<16x128xf32>
    %c2_27 = arith.constant 2 : index
    %c0_28 = arith.constant 0 : index
    %c0_29 = arith.constant 0 : index
    %28 = vector.load %arg3[%c2_27, %c0_28, %c0_29] : memref<3x128x128xf32, #tpu.memory_space<vmem>>, vector<1x128x128xf32>
    %29 = vector.shape_cast %28 : vector<1x128x128xf32> to vector<128x128xf32>
    %cst_30 = arith.constant dense<0.000000e+00> : vector<16x128xf32>
    %30 = tpu.matmul %23, %29, %cst_30 {dimension_numbers = #tpu.dot_dimension_numbers<[1], [0], [0], [1], [0, 0, 1, 1], [], []>} : vector<16x128xf32>, vector<128x128xf32>, vector<16x128xf32> -> vector<16x128xf32>
    %31 = arith.addf %21, %30 : vector<16x128xf32>
    %cst_31 = arith.constant dense<0.000000e+00> : vector<128xf32>
    %32 = vector.multi_reduction <add>, %27, %cst_31 [0] : vector<16x128xf32> to vector<128xf32>
    %33 = vector.shape_cast %32 : vector<128xf32> to vector<1x128xf32>
    %34 = arith.mulf %27, %27 : vector<16x128xf32>
    %cst_32 = arith.constant dense<0.000000e+00> : vector<128xf32>
    %35 = vector.multi_reduction <add>, %34, %cst_32 [0] : vector<16x128xf32> to vector<128xf32>
    %36 = vector.shape_cast %35 : vector<128xf32> to vector<1x128xf32>
    %37 = tpu.concatenate %33, %36 in 0 : vector<1x128xf32>, vector<1x128xf32> -> vector<2x128xf32>
    %38 = vector.shape_cast %37 : vector<2x128xf32> to vector<1x2x128xf32>
    %c0_33 = arith.constant 0 : index
    %c0_34 = arith.constant 0 : index
    %c0_35 = arith.constant 0 : index
    %39 = vector.load %arg5[%c0_33, %c0_34, %c0_35] : memref<1x2x128xf32, #tpu.memory_space<vmem>>, vector<1x2x128xf32>
    tpu.vector_store %arg5[%c0_33, %c0_34, %c0_35], %38 {strides = array<i32>} : memref<1x2x128xf32, #tpu.memory_space<vmem>>, vector<1x2x128xf32>,
    %40 = vector.shape_cast %27 : vector<16x128xf32> to vector<1x16x128xf32>
    %c0_36 = arith.constant 0 : index
    %c0_37 = arith.constant 0 : index
    %c0_38 = arith.constant 0 : index
    %41 = vector.load %arg4[%c0_36, %c0_37, %c0_38] : memref<1x16x128xf32, #tpu.memory_space<vmem>>, vector<1x16x128xf32>
    tpu.vector_store %arg4[%c0_36, %c0_37, %c0_38], %40 {strides = array<i32>} : memref<1x16x128xf32, #tpu.memory_space<vmem>>, vector<1x16x128xf32>,
    %42 = vector.shape_cast %31 : vector<16x128xf32> to vector<1x16x128xf32>
    %c0_39 = arith.constant 0 : index
    %c0_40 = arith.constant 0 : index
    %c0_41 = arith.constant 0 : index
    %43 = vector.load %arg6[%c0_39, %c0_40, %c0_41] : memref<1x16x128xf32, #tpu.memory_space<vmem>>, vector<1x16x128xf32>
    tpu.vector_store %arg6[%c0_39, %c0_40, %c0_41], %42 {strides = array<i32>} : memref<1x16x128xf32, #tpu.memory_space<vmem>>, vector<1x16x128xf32>,
    return
  }
  func.func @transform_0(%arg0: i32) -> (i32, i32, i32) {
    %c0_i32 = arith.constant 0 : i32
    %c0_i32_0 = arith.constant 0 : i32
    %c0_i32_1 = arith.constant 0 : i32
    return %arg0, %c0_i32, %c0_i32_0 : i32, i32, i32
  }
  func.func @transform_1(%arg0: i32) -> (i32, i32, i32) {
    %c0_i32 = arith.constant 0 : i32
    %c0_i32_0 = arith.constant 0 : i32
    %c0_i32_1 = arith.constant 0 : i32
    %c0_i32_2 = arith.constant 0 : i32
    return %c0_i32, %c0_i32_0, %c0_i32_1 : i32, i32, i32
  }
  func.func @transform_2(%arg0: i32) -> (i32, i32, i32) {
    %c0_i32 = arith.constant 0 : i32
    %c0_i32_0 = arith.constant 0 : i32
    %c0_i32_1 = arith.constant 0 : i32
    %c0_i32_2 = arith.constant 0 : i32
    return %c0_i32, %c0_i32_0, %c0_i32_1 : i32, i32, i32
  }
  func.func @transform_3(%arg0: i32) -> (i32, i32, i32) {
    %c0_i32 = arith.constant 0 : i32
    %c0_i32_0 = arith.constant 0 : i32
    %c0_i32_1 = arith.constant 0 : i32
    return %arg0, %c0_i32, %c0_i32_0 : i32, i32, i32
  }
  func.func @transform_4(%arg0: i32) -> (i32, i32, i32) {
    %c0_i32 = arith.constant 0 : i32
    %c0_i32_0 = arith.constant 0 : i32
    %c0_i32_1 = arith.constant 0 : i32
    return %arg0, %c0_i32, %c0_i32_0 : i32, i32, i32
  }
  func.func @transform_5(%arg0: i32) -> (i32, i32, i32) {
    %c0_i32 = arith.constant 0 : i32
    %c0_i32_0 = arith.constant 0 : i32
    %c0_i32_1 = arith.constant 0 : i32
    return %arg0, %c0_i32, %c0_i32_0 : i32, i32, i32
  }
}

module attributes {stable_mosaic.version = 11 : i64} {
  func.func @kernel(%arg0: i32, %arg1: memref<1x16x128xf32, #tpu.memory_space<vmem>>, %arg2: memref<1x128xf32, #tpu.memory_space<vmem>>, %arg3: memref<1x128xf32, #tpu.memory_space<vmem>>, %arg4: memref<3x128x128xf32, #tpu.memory_space<vmem>>, %arg5: memref<1x16x128xf32, #tpu.memory_space<vmem>>, %arg6: memref<1x2x128xf32, #tpu.memory_space<vmem>>) attributes {dimension_semantics = [#tpu.dimension_semantics<parallel>], iteration_bounds = array<i64: 2>, scalar_prefetch = 0 : i64, scratch_operands = 0 : i64, tpu.core_type = #tpu.core_type<tc>, window_params = [{transform_indices = @transform_0, window_bounds = array<i64: 1, 16, 128>}, {pipeline_mode = #tpu.pipeline_mode<synchronous>, transform_indices = @transform_1, window_bounds = array<i64: 1, 128>}, {pipeline_mode = #tpu.pipeline_mode<synchronous>, transform_indices = @transform_2, window_bounds = array<i64: 1, 128>}, {pipeline_mode = #tpu.pipeline_mode<synchronous>, transform_indices = @transform_3, window_bounds = array<i64: 3, 128, 128>}, {transform_indices = @transform_4, window_bounds = array<i64: 1, 16, 128>}, {transform_indices = @transform_5, window_bounds = array<i64: 1, 2, 128>}]} {
    %c0 = arith.constant 0 : index
    %c0_0 = arith.constant 0 : index
    %c0_1 = arith.constant 0 : index
    %0 = vector.load %arg1[%c0, %c0_0, %c0_1] : memref<1x16x128xf32, #tpu.memory_space<vmem>>, vector<1x16x128xf32>
    %c0_2 = arith.constant 0 : index
    %c0_3 = arith.constant 0 : index
    %1 = vector.load %arg2[%c0_2, %c0_3] : memref<1x128xf32, #tpu.memory_space<vmem>>, vector<1x128xf32>
    %2 = vector.shape_cast %1 : vector<1x128xf32> to vector<1x1x128xf32>
    %3 = vector.broadcast %2 : vector<1x1x128xf32> to vector<1x16x128xf32>
    %4 = arith.mulf %0, %3 : vector<1x16x128xf32>
    %c0_4 = arith.constant 0 : index
    %c0_5 = arith.constant 0 : index
    %5 = vector.load %arg3[%c0_4, %c0_5] : memref<1x128xf32, #tpu.memory_space<vmem>>, vector<1x128xf32>
    %6 = vector.shape_cast %5 : vector<1x128xf32> to vector<1x1x128xf32>
    %7 = vector.broadcast %6 : vector<1x1x128xf32> to vector<1x16x128xf32>
    %8 = arith.addf %4, %7 : vector<1x16x128xf32>
    %cst = arith.constant 0.000000e+00 : f32
    %9 = vector.broadcast %cst : f32 to vector<1x16x128xf32>
    %10 = arith.maximumf %8, %9 : vector<1x16x128xf32>
    %cst_6 = arith.constant 0.000000e+00 : f32
    %11 = vector.broadcast %cst_6 : f32 to vector<1x1x128xf32>
    %12 = tpu.concatenate %11, %10, %11 in 1 : vector<1x1x128xf32>, vector<1x16x128xf32>, vector<1x1x128xf32> -> vector<1x18x128xf32>
    %cst_7 = arith.constant 0.000000e+00 : f32
    %13 = vector.broadcast %cst_7 : f32 to vector<16x128xf32>
    %14 = vector.extract_strided_slice %12 {offsets = [0, 0, 0], sizes = [1, 16, 128], strides = [1, 1, 1]} : vector<1x18x128xf32> to vector<1x16x128xf32>
    %15 = vector.shape_cast %14 : vector<1x16x128xf32> to vector<16x128xf32>
    %c0_8 = arith.constant 0 : index
    %c0_9 = arith.constant 0 : index
    %c0_10 = arith.constant 0 : index
    %16 = vector.load %arg4[%c0_8, %c0_9, %c0_10] : memref<3x128x128xf32, #tpu.memory_space<vmem>>, vector<1x128x128xf32>
    %17 = vector.shape_cast %16 : vector<1x128x128xf32> to vector<128x128xf32>
    %cst_11 = arith.constant dense<0.000000e+00> : vector<16x128xf32>
    %18 = tpu.matmul %15, %17, %cst_11 {dimension_numbers = #tpu.dot_dimension_numbers<[1], [0], [0], [1], [0, 0, 1, 1], [], []>} : vector<16x128xf32>, vector<128x128xf32>, vector<16x128xf32> -> vector<16x128xf32>
    %19 = arith.addf %13, %18 : vector<16x128xf32>
    %20 = vector.extract_strided_slice %12 {offsets = [0, 1, 0], sizes = [1, 16, 128], strides = [1, 1, 1]} : vector<1x18x128xf32> to vector<1x16x128xf32>
    %21 = vector.shape_cast %20 : vector<1x16x128xf32> to vector<16x128xf32>
    %c1 = arith.constant 1 : index
    %c0_12 = arith.constant 0 : index
    %c0_13 = arith.constant 0 : index
    %22 = vector.load %arg4[%c1, %c0_12, %c0_13] : memref<3x128x128xf32, #tpu.memory_space<vmem>>, vector<1x128x128xf32>
    %23 = vector.shape_cast %22 : vector<1x128x128xf32> to vector<128x128xf32>
    %cst_14 = arith.constant dense<0.000000e+00> : vector<16x128xf32>
    %24 = tpu.matmul %21, %23, %cst_14 {dimension_numbers = #tpu.dot_dimension_numbers<[1], [0], [0], [1], [0, 0, 1, 1], [], []>} : vector<16x128xf32>, vector<128x128xf32>, vector<16x128xf32> -> vector<16x128xf32>
    %25 = arith.addf %19, %24 : vector<16x128xf32>
    %26 = vector.extract_strided_slice %12 {offsets = [0, 2, 0], sizes = [1, 16, 128], strides = [1, 1, 1]} : vector<1x18x128xf32> to vector<1x16x128xf32>
    %27 = vector.shape_cast %26 : vector<1x16x128xf32> to vector<16x128xf32>
    %c2 = arith.constant 2 : index
    %c0_15 = arith.constant 0 : index
    %c0_16 = arith.constant 0 : index
    %28 = vector.load %arg4[%c2, %c0_15, %c0_16] : memref<3x128x128xf32, #tpu.memory_space<vmem>>, vector<1x128x128xf32>
    %29 = vector.shape_cast %28 : vector<1x128x128xf32> to vector<128x128xf32>
    %cst_17 = arith.constant dense<0.000000e+00> : vector<16x128xf32>
    %30 = tpu.matmul %27, %29, %cst_17 {dimension_numbers = #tpu.dot_dimension_numbers<[1], [0], [0], [1], [0, 0, 1, 1], [], []>} : vector<16x128xf32>, vector<128x128xf32>, vector<16x128xf32> -> vector<16x128xf32>
    %31 = arith.addf %25, %30 : vector<16x128xf32>
    %cst_18 = arith.constant dense<0.000000e+00> : vector<128xf32>
    %32 = vector.multi_reduction <add>, %31, %cst_18 [0] : vector<16x128xf32> to vector<128xf32>
    %33 = vector.shape_cast %32 : vector<128xf32> to vector<1x128xf32>
    %34 = arith.mulf %31, %31 : vector<16x128xf32>
    %cst_19 = arith.constant dense<0.000000e+00> : vector<128xf32>
    %35 = vector.multi_reduction <add>, %34, %cst_19 [0] : vector<16x128xf32> to vector<128xf32>
    %36 = vector.shape_cast %35 : vector<128xf32> to vector<1x128xf32>
    %37 = tpu.concatenate %33, %36 in 0 : vector<1x128xf32>, vector<1x128xf32> -> vector<2x128xf32>
    %38 = vector.shape_cast %37 : vector<2x128xf32> to vector<1x2x128xf32>
    %c0_20 = arith.constant 0 : index
    %c0_21 = arith.constant 0 : index
    %c0_22 = arith.constant 0 : index
    %39 = vector.load %arg6[%c0_20, %c0_21, %c0_22] : memref<1x2x128xf32, #tpu.memory_space<vmem>>, vector<1x2x128xf32>
    tpu.vector_store %arg6[%c0_20, %c0_21, %c0_22], %38 {strides = array<i32>} : memref<1x2x128xf32, #tpu.memory_space<vmem>>, vector<1x2x128xf32>,
    %40 = vector.shape_cast %31 : vector<16x128xf32> to vector<1x16x128xf32>
    %c0_23 = arith.constant 0 : index
    %c0_24 = arith.constant 0 : index
    %c0_25 = arith.constant 0 : index
    %41 = vector.load %arg5[%c0_23, %c0_24, %c0_25] : memref<1x16x128xf32, #tpu.memory_space<vmem>>, vector<1x16x128xf32>
    tpu.vector_store %arg5[%c0_23, %c0_24, %c0_25], %40 {strides = array<i32>} : memref<1x16x128xf32, #tpu.memory_space<vmem>>, vector<1x16x128xf32>,
    return
  }
  func.func @transform_0(%arg0: i32) -> (i32, i32, i32) {
    %c0_i32 = arith.constant 0 : i32
    %c0_i32_0 = arith.constant 0 : i32
    %c0_i32_1 = arith.constant 0 : i32
    return %arg0, %c0_i32, %c0_i32_0 : i32, i32, i32
  }
  func.func @transform_1(%arg0: i32) -> (i32, i32) {
    %c0_i32 = arith.constant 0 : i32
    %c0_i32_0 = arith.constant 0 : i32
    %c0_i32_1 = arith.constant 0 : i32
    return %c0_i32, %c0_i32_0 : i32, i32
  }
  func.func @transform_2(%arg0: i32) -> (i32, i32) {
    %c0_i32 = arith.constant 0 : i32
    %c0_i32_0 = arith.constant 0 : i32
    %c0_i32_1 = arith.constant 0 : i32
    return %c0_i32, %c0_i32_0 : i32, i32
  }
  func.func @transform_3(%arg0: i32) -> (i32, i32, i32) {
    %c0_i32 = arith.constant 0 : i32
    %c0_i32_0 = arith.constant 0 : i32
    %c0_i32_1 = arith.constant 0 : i32
    %c0_i32_2 = arith.constant 0 : i32
    return %c0_i32, %c0_i32_0, %c0_i32_1 : i32, i32, i32
  }
  func.func @transform_4(%arg0: i32) -> (i32, i32, i32) {
    %c0_i32 = arith.constant 0 : i32
    %c0_i32_0 = arith.constant 0 : i32
    %c0_i32_1 = arith.constant 0 : i32
    return %arg0, %c0_i32, %c0_i32_0 : i32, i32, i32
  }
  func.func @transform_5(%arg0: i32) -> (i32, i32, i32) {
    %c0_i32 = arith.constant 0 : i32
    %c0_i32_0 = arith.constant 0 : i32
    %c0_i32_1 = arith.constant 0 : i32
    return %arg0, %c0_i32, %c0_i32_0 : i32, i32, i32
  }
}

module attributes {stable_mosaic.version = 11 : i64} {
  func.func @kernel(%arg0: i32, %arg1: memref<1x16x128xf32, #tpu.memory_space<vmem>>, %arg2: memref<1x16x128xf32, #tpu.memory_space<vmem>>, %arg3: memref<1x128xf32, #tpu.memory_space<vmem>>, %arg4: memref<1x128xf32, #tpu.memory_space<vmem>>, %arg5: memref<1x16x128xf32, #tpu.memory_space<vmem>>) attributes {dimension_semantics = [#tpu.dimension_semantics<parallel>], iteration_bounds = array<i64: 2>, scalar_prefetch = 0 : i64, scratch_operands = 0 : i64, tpu.core_type = #tpu.core_type<tc>, window_params = [{transform_indices = @transform_0, window_bounds = array<i64: 1, 16, 128>}, {transform_indices = @transform_1, window_bounds = array<i64: 1, 16, 128>}, {pipeline_mode = #tpu.pipeline_mode<synchronous>, transform_indices = @transform_2, window_bounds = array<i64: 1, 128>}, {pipeline_mode = #tpu.pipeline_mode<synchronous>, transform_indices = @transform_3, window_bounds = array<i64: 1, 128>}, {transform_indices = @transform_4, window_bounds = array<i64: 1, 16, 128>}]} {
    %c0 = arith.constant 0 : index
    %c0_0 = arith.constant 0 : index
    %c0_1 = arith.constant 0 : index
    %0 = vector.load %arg2[%c0, %c0_0, %c0_1] : memref<1x16x128xf32, #tpu.memory_space<vmem>>, vector<1x16x128xf32>
    %c0_2 = arith.constant 0 : index
    %c0_3 = arith.constant 0 : index
    %c0_4 = arith.constant 0 : index
    %1 = vector.load %arg1[%c0_2, %c0_3, %c0_4] : memref<1x16x128xf32, #tpu.memory_space<vmem>>, vector<1x16x128xf32>
    %c0_5 = arith.constant 0 : index
    %c0_6 = arith.constant 0 : index
    %2 = vector.load %arg3[%c0_5, %c0_6] : memref<1x128xf32, #tpu.memory_space<vmem>>, vector<1x128xf32>
    %3 = vector.shape_cast %2 : vector<1x128xf32> to vector<1x1x128xf32>
    %4 = vector.broadcast %3 : vector<1x1x128xf32> to vector<1x16x128xf32>
    %5 = arith.mulf %1, %4 : vector<1x16x128xf32>
    %c0_7 = arith.constant 0 : index
    %c0_8 = arith.constant 0 : index
    %6 = vector.load %arg4[%c0_7, %c0_8] : memref<1x128xf32, #tpu.memory_space<vmem>>, vector<1x128xf32>
    %7 = vector.shape_cast %6 : vector<1x128xf32> to vector<1x1x128xf32>
    %8 = vector.broadcast %7 : vector<1x1x128xf32> to vector<1x16x128xf32>
    %9 = arith.addf %5, %8 : vector<1x16x128xf32>
    %10 = arith.addf %9, %0 : vector<1x16x128xf32>
    %cst = arith.constant 0.000000e+00 : f32
    %11 = vector.broadcast %cst : f32 to vector<1x16x128xf32>
    %12 = arith.maximumf %10, %11 : vector<1x16x128xf32>
    %c0_9 = arith.constant 0 : index
    %c0_10 = arith.constant 0 : index
    %c0_11 = arith.constant 0 : index
    %13 = vector.load %arg5[%c0_9, %c0_10, %c0_11] : memref<1x16x128xf32, #tpu.memory_space<vmem>>, vector<1x16x128xf32>
    tpu.vector_store %arg5[%c0_9, %c0_10, %c0_11], %12 {strides = array<i32>} : memref<1x16x128xf32, #tpu.memory_space<vmem>>, vector<1x16x128xf32>,
    return
  }
  func.func @transform_0(%arg0: i32) -> (i32, i32, i32) {
    %c0_i32 = arith.constant 0 : i32
    %c0_i32_0 = arith.constant 0 : i32
    %c0_i32_1 = arith.constant 0 : i32
    return %arg0, %c0_i32, %c0_i32_0 : i32, i32, i32
  }
  func.func @transform_1(%arg0: i32) -> (i32, i32, i32) {
    %c0_i32 = arith.constant 0 : i32
    %c0_i32_0 = arith.constant 0 : i32
    %c0_i32_1 = arith.constant 0 : i32
    return %arg0, %c0_i32, %c0_i32_0 : i32, i32, i32
  }
  func.func @transform_2(%arg0: i32) -> (i32, i32) {
    %c0_i32 = arith.constant 0 : i32
    %c0_i32_0 = arith.constant 0 : i32
    %c0_i32_1 = arith.constant 0 : i32
    return %c0_i32, %c0_i32_0 : i32, i32
  }
  func.func @transform_3(%arg0: i32) -> (i32, i32) {
    %c0_i32 = arith.constant 0 : i32
    %c0_i32_0 = arith.constant 0 : i32
    %c0_i32_1 = arith.constant 0 : i32
    return %c0_i32, %c0_i32_0 : i32, i32
  }
  func.func @transform_4(%arg0: i32) -> (i32, i32, i32) {
    %c0_i32 = arith.constant 0 : i32
    %c0_i32_0 = arith.constant 0 : i32
    %c0_i32_1 = arith.constant 0 : i32
    return %arg0, %c0_i32, %c0_i32_0 : i32, i32, i32
  }
}

</mosaic_0001>

<bundles_post_ra>
// kernel: conv_block_forward.5
= control target key start
LH: loop header
LB: loop body
LE: loop exit
PB: predicated region body
PF: predicated region fallthrough
CT: control target
= control target key end

     0   :  { %s372_s15 = smov 0   ;;  %s398_s0 = inlined_call_operand.vmem [shape: f32[2,16,128], index: 0, kind: input, shape index: {}]   ;;  %s399_s1 = inlined_call_operand.vmem [shape: f32[2,16,128], index: 1, kind: input, shape index: {}]   ;;  %s400_s2 = inlined_call_operand.vmem [shape: f32[1,128], index: 2, kind: input, shape index: {}]   ;;  %s401_s3 = inlined_call_operand.vmem [shape: f32[1,128], index: 3, kind: input, shape index: {}]   ;;  %s402_s4 = inlined_call_operand.vmem [shape: f32[2,16,128], index: 4, kind: output, shape index: {}]  }
   0x1 LB: > { %s313_s16 = sadd.s32 4294967295, %s345_s15   ;;  %p317_p0 = scmp.ge.s32.totalorder %s345_s15, 1  ;;  %s345_s15 = sphi %s372_s15, %s14_s15  }
   0x2   : > { %p172_p1 = scmp.lt.s32.totalorder %s345_s15, 3 }
   0x4   : > { %p173_p2 = pnand %p317_p0, %p172_p1 }
   0x5   : > { %p203_p3 = scmp.lt.s32.totalorder (!%p173_p2), %s313_s16, 1 }
   0x6   : > { %176 = sbr.rel (%p173_p2) target bundleno = 24 (0x18), region = 36 }
   0xb   : > { %s404_s16 = smov (!%p203_p3, %s313_s16), 1  ;;  %v324_v0 = vld [vmem:[%s400_s2] ss:$0 sm:$0xff] }
   0xc   : > { %s328_s17 = sshll.u32 %s404_s16, 4  ;;  %v325_v3 = vld [vmem:[%s401_s3] ss:$0 sm:$0xff] }
   0xd   : > { %s207_s22 = scalar_lea.vmem %s398_s0, %s328_s17  ;;  %s212_s25 = scalar_lea.vmem %s399_s1, %s328_s17 }
   0xe   : > { %v220_v1 = vld [vmem:[%s207_s22] sm:$0xff]  ;;  %v221_v2 = vld [vmem:[%s207_s22 + $0x8] sm:$0xff]  ;;  %s217_s30 = scalar_lea.vmem %s402_s4, %s328_s17 }
   0xf   : > { %v229_v4 = vmul.f32 %v324_v0, %v220_v1  ;;  %v230_v5 = vmul.f32 %v324_v0, %v221_v2  ;;  %v218_v6 = vld [vmem:[%s212_s25] sm:$0xff]  ;;  %v219_v7 = vld [vmem:[%s212_s25 + $0x8] sm:$0xff] }
  0x11   : > { %v238_v8 = vadd.f32 %v325_v3, %v229_v4  ;;  %v239_v9 = vadd.f32 %v325_v3, %v230_v5 }
  0x13   : > { %v240_v10 = vadd.f32 %v238_v8, %v218_v6  ;;  %v241_v11 = vadd.f32 %v239_v9, %v219_v7 }
  0x15   : > { %v242_v12 = vmax.f32 %v240_v10, 0.0  ;;  %v243_v13 = vmax.f32 %v241_v11, 0.0 }
  0x17   : > { %244 = vst [vmem:[%s217_s30] sm:$0xff] %v242_v12  ;;  %245 = vst [vmem:[%s217_s30 + $0x8] sm:$0xff] %v243_v13 }
  0x18 PF: > { %s14_s15 = sadd.s32 1, %s345_s15  }
  0x19   : > { %p11_p4 = scmp.ge.s32.totalorder %s14_s15, 4  }
  0x1b   :  { %13 = sbr.rel (!%p11_p4) target bundleno = 1 (0x1), region = 69 }

// kernel: conv_block_forward.4
= control target key start
LH: loop header
LB: loop body
LE: loop exit
PB: predicated region body
PF: predicated region fallthrough
CT: control target
= control target key end

     0   :  { %s925_s18 = smov 0   ;;  %s1125_s0 = inlined_call_operand.vmem [shape: f32[2,16,128], index: 0, kind: input, shape index: {}]   ;;  %s1126_s1 = inlined_call_operand.vmem [shape: f32[1,128], index: 1, kind: input, shape index: {}]   ;;  %s1127_s2 = inlined_call_operand.vmem [shape: f32[1,128], index: 2, kind: input, shape index: {}]   ;;  %s1128_s3 = inlined_call_operand.vmem [shape: f32[3,128,128], index: 3, kind: input, shape index: {}]   ;;  %s1129_s4 = inlined_call_operand.vmem [shape: f32[2,16,128], index: 4, kind: output, shape index: {0}]   ;;  %s1130_s5 = inlined_call_operand.vmem [shape: f32[2,2,128], index: 5, kind: output, shape index: {1}]  }
   0x1 LB: > { %s670_s19 = sadd.s32 4294967295, %s893_s18   ;;  %p674_p0 = scmp.ge.s32.totalorder %s893_s18, 1  ;;  %s893_s18 = sphi %s925_s18, %s16_s18  }
   0x2   : > { %p190_p1 = scmp.lt.s32.totalorder %s893_s18, 3 }
   0x4   : > { %p191_p2 = pnand %p674_p0, %p190_p1 }
   0x5   : > { %p222_p3 = scmp.lt.s32.totalorder (!%p191_p2), %s670_s19, 1 }
   0x6   : > { %194 = sbr.rel (%p191_p2) target bundleno = 293 (0x125), region = 36 }
   0xb   : > { %v697_v0 = vld [vmem:[%s1128_s3 + $0xf8] sm:$0xff]  ;;  %v696_v2 = vld [vmem:[%s1128_s3 + $0xf0] sm:$0xff]  ;;  %v695_v4 = vld [vmem:[%s1128_s3 + $0xe8] sm:$0xff]  ;;  %s1132_s19 = smov (!%p222_p3, %s670_s19), 1  ;;  %vm260_vm0 = vcmask 1040384   ;;  %vm304_vm1 = vcmask 1046528  }
   0xc   : > { %v284_v1 = vld [vmem:[%s1128_s3 + $0x78] sm:$0xff]  ;;  %774 = vmatprep.subr.mxu0 %v697_v0  ;;  %v283_v3 = vld [vmem:[%s1128_s3 + $0x70] sm:$0xff]  ;;  %v282_v5 = vld [vmem:[%s1128_s3 + $0x68] sm:$0xff]  ;;  %s718_s11 = sshll.u32 %s1132_s19, 4  ;;  %vm479_vm2 = vcmask 1045504  }
   0xd   : > { %809 = vmatprep.subr.mxu1 %v284_v1  ;;  %775 = vmatpush3.msra.mxu0 %v697_v0  ;;  %v694_v6 = vld [vmem:[%s1128_s3 + $0xe0] sm:$0xff]  ;;  %v693_v8 = vld [vmem:[%s1128_s3 + $0xd8] sm:$0xff]  ;;  %s226_s20 = scalar_lea.vmem %s1125_s0, %s718_s11  ;;  %v692_v10 = vld [vmem:[%s1128_s3 + $0xd0] sm:$0xff]  ;;  %s231_s13 = scalar_lea.vmem %s1129_s4, %s718_s11 }
   0xe   : > { %810 = vmatpush3.msra.mxu1 %v284_v1  ;;  %776 = vmatprep.subr.mxu0 %v696_v2  ;;  %v281_v7 = vld [vmem:[%s1128_s3 + $0x60] sm:$0xff]  ;;  %v280_v9 = vld [vmem:[%s1128_s3 + $0x58] sm:$0xff]  ;;  %v279_v11 = vld [vmem:[%s1128_s3 + $0x50] sm:$0xff]  ;;  %s679_s11 = sshll.u32 %s1132_s19, 1 }
   0xf   : > { %811 = vmatprep.subr.mxu1 %v283_v3  ;;  %777 = vmatpush3.msra.mxu0 %v696_v2  ;;  %v691_v12 = vld [vmem:[%s1128_s3 + $0xc8] sm:$0xff]  ;;  %v236_v14 = vld [vmem:[%s226_s20] sm:$0xff]  ;;  %v689_v22 = vld [vmem:[%s1128_s3 + $0xb8] sm:$0xff]  ;;  %s235_s16 = scalar_lea.vmem %s1130_s5, %s679_s11 }
  0x10   : > { %812 = vmatpush3.msra.mxu1 %v283_v3  ;;  %778 = vmatprep.subr.mxu0 %v695_v4  ;;  %v278_v13 = vld [vmem:[%s1128_s3 + $0x48] sm:$0xff]  ;;  %v680_v16 = vld [vmem:[%s1126_s1] ss:$0 sm:$0xff]  ;;  %v276_v23 = vld [vmem:[%s1128_s3 + $0x38] sm:$0xff] }
  0x11   : > { %813 = vmatprep.subr.mxu1 %v282_v5  ;;  %779 = vmatpush3.msra.mxu0 %v695_v4  ;;  %v237_v15 = vld [vmem:[%s226_s20 + $0x8] sm:$0xff]  ;;  %v681_v17 = vld [vmem:[%s1127_s2] ss:$0 sm:$0xff]  ;;  %v245_v20 = vmul.f32 %v680_v16, %v236_v14  ;;  %v688_v26 = vld [vmem:[%s1128_s3 + $0xb0] sm:$0xff] }
  0x12   : > { %814 = vmatpush3.msra.mxu1 %v282_v5  ;;  %780 = vmatprep.subr.mxu0 %v694_v6  ;;  %v690_v18 = vld [vmem:[%s1128_s3 + $0xc0] sm:$0xff]  ;;  %v246_v21 = vmul.f32 %v680_v16, %v237_v15  ;;  %v275_v27 = vld [vmem:[%s1128_s3 + $0x30] sm:$0xff]  ;;  %v687_v30 = vld [vmem:[%s1128_s3 + $0xa8] sm:$0xff] }
  0x13   : > { %815 = vmatprep.subr.mxu1 %v281_v7  ;;  %781 = vmatpush3.msra.mxu0 %v694_v6  ;;  %v277_v19 = vld [vmem:[%s1128_s3 + $0x40] sm:$0xff]  ;;  %v254_v24 = vadd.f32 %v681_v17, %v245_v20  ;;  %v274_v31 = vld [vmem:[%s1128_s3 + $0x28] sm:$0xff]  ;;  %v685_v36 = vld [vmem:[%s1128_s3 + $0x98] sm:$0xff] }
  0x14   : > { %816 = vmatpush3.msra.mxu1 %v281_v7  ;;  %782 = vmatprep.subr.mxu0 %v693_v8  ;;  %v255_v25 = vadd.f32 %v681_v17, %v246_v21  ;;  %v686_v34 = vld [vmem:[%s1128_s3 + $0xa0] sm:$0xff]  ;;  %v272_v37 = vld [vmem:[%s1128_s3 + $0x18] sm:$0xff]  ;;  %v684_v40 = vld [vmem:[%s1128_s3 + $0x90] sm:$0xff] }
  0x15   : > { %817 = vmatprep.subr.mxu1 %v280_v9  ;;  %783 = vmatpush3.msra.mxu0 %v693_v8  ;;  %v256_v28 = vmax.f32 %v254_v24, 0.0  ;;  %v273_v35 = vld [vmem:[%s1128_s3 + $0x20] sm:$0xff]  ;;  %v271_v41 = vld [vmem:[%s1128_s3 + $0x10] sm:$0xff]  ;;  %v683_v45 = vld [vmem:[%s1128_s3 + $0x88] sm:$0xff] }
  0x16   : > { %818 = vmatpush3.msra.mxu1 %v280_v9  ;;  %784 = vmatprep.subr.mxu0 %v692_v10  ;;  %v257_v29 = vmax.f32 %v255_v25, 0.0  ;;  %v270_v46 = vld [vmem:[%s1128_s3 + $0x8] sm:$0xff]  ;;  %v682_v48 = vld [vmem:[%s1128_s3 + $0x80] sm:$0xff]  ;;  %vm698_vm3 = vmneg %vm260_vm0 }
  0x17   : > { %819 = vmatprep.subr.mxu1 %v279_v11  ;;  %785 = vmatpush3.msra.mxu0 %v692_v10  ;;  %v261_v32 = vrot.slane %v256_v28, 7  ;;  %v269_v49 = vld [vmem:[%s1128_s3] sm:$0xff]  ;;  %v715_v54 = vld [vmem:[%s1128_s3 + $0x178] sm:$0xff]  ;;  %v714_v56 = vld [vmem:[%s1128_s3 + $0x170] sm:$0xff] }
  0x18   : > { %820 = vmatpush3.msra.mxu1 %v279_v11  ;;  %786 = vmatprep.subr.mxu0 %v691_v12  ;;  %v262_v33 = vrot.slane %v257_v29, 7  ;;  %v713_v57 = vld [vmem:[%s1128_s3 + $0x168] sm:$0xff]  ;;  %v712_v58 = vld [vmem:[%s1128_s3 + $0x160] sm:$0xff]  ;;  %v711_v59 = vld [vmem:[%s1128_s3 + $0x158] sm:$0xff] }
  0x19   : > { %821 = vmatprep.subr.mxu1 %v278_v13  ;;  %787 = vmatpush3.msra.mxu0 %v691_v12  ;;  %v267_v39 = vsel %vm260_vm0, 0.0, %v261_v32  ;;  %v710_v60 = vld [vmem:[%s1128_s3 + $0x150] sm:$0xff]  ;;  %v709_v61 = vld [vmem:[%s1128_s3 + $0x148] sm:$0xff]  ;;  %v708_v62 = vld [vmem:[%s1128_s3 + $0x140] sm:$0xff] }
  0x1a   : > { %822 = vmatpush3.msra.mxu1 %v278_v13  ;;  %788 = vmatprep.subr.mxu0 %v690_v18  ;;  %v1026_v38 = vsel %vm260_vm0, %v261_v32, %v262_v33  ;;  %v1036_v42 = vsel %vm260_vm0, %v262_v33, 0.0  ;;  %v305_v43 = vrot.slane %v267_v39, 1  ;;  %v480_v50 = vrot.slane %v267_v39, 2  ;;  %v707_v63 = vld [vmem:[%s1128_s3 + $0x138] sm:$0xff]  ;;  %v706_v0 = vld [vmem:[%s1128_s3 + $0x130] sm:$0xff]  ;;  %v705_v1 = vld [vmem:[%s1128_s3 + $0x128] sm:$0xff] }
  0x1b   : > { %823 = vmatprep.subr.mxu1 %v277_v19  ;;  %789 = vmatpush3.msra.mxu0 %v690_v18  ;;  %v306_v44 = vrot.slane %v1026_v38, 1  ;;  %v308_v47 = vrot.slane %v1036_v42, 1  ;;  %v481_v51 = vrot.slane %v1026_v38, 2  ;;  %v704_v2 = vld [vmem:[%s1128_s3 + $0x120] sm:$0xff]  ;;  %v703_v3 = vld [vmem:[%s1128_s3 + $0x118] sm:$0xff]  ;;  %v702_v4 = vld [vmem:[%s1128_s3 + $0x110] sm:$0xff] }
  0x1c   : > { %824 = vmatpush3.msra.mxu1 %v277_v19  ;;  %790 = vmatprep.subr.mxu0 %v689_v22  ;;  %v701_v5 = vld [vmem:[%s1128_s3 + $0x108] sm:$0xff]  ;;  %v483_v6 = vrot.slane %v1036_v42, 2  ;;  %v700_v7 = vld [vmem:[%s1128_s3 + $0x100] sm:$0xff] }
  0x1d   : > { %825 = vmatprep.subr.mxu1 %v276_v23  ;;  %791 = vmatpush3.msra.mxu0 %v689_v22  ;;  %v307_v52 = vsel %vm304_vm1, %v305_v43, %v306_v44  ;;  %v309_v53 = vsel %vm304_vm1, %v306_v44, %v308_v47  ;;  %v482_v55 = vsel %vm479_vm2, %v480_v50, %v481_v51 }
  0x1e   : > { %826 = vmatpush3.msra.mxu1 %v276_v23  ;;  %792 = vmatprep.subr.mxu0 %v688_v26  ;;  %v484_v8 = vsel %vm479_vm2, %v481_v51, %v483_v6 }
  0x1f   : > { %827 = vmatprep.subr.mxu1 %v275_v27  ;;  %793 = vmatpush3.msra.mxu0 %v688_v26 }
  0x20   : > { %828 = vmatpush3.msra.mxu1 %v275_v27  ;;  %794 = vmatprep.subr.mxu0 %v687_v30 }
  0x21   : > { %829 = vmatprep.subr.mxu1 %v274_v31  ;;  %795 = vmatpush3.msra.mxu0 %v687_v30 }
  0x22   : > { %830 = vmatpush3.msra.mxu1 %v274_v31  ;;  %796 = vmatprep.subr.mxu0 %v686_v34 }
  0x23   : > { %831 = vmatprep.subr.mxu1 %v273_v35  ;;  %797 = vmatpush3.msra.mxu0 %v686_v34 }
  0x24   : > { %832 = vmatpush3.msra.mxu1 %v273_v35  ;;  %798 = vmatprep.subr.mxu0 %v685_v36 }
  0x25   : > { %833 = vmatprep.subr.mxu1 %v272_v37  ;;  %799 = vmatpush3.msra.mxu0 %v685_v36 }
  0x26   : > { %834 = vmatpush3.msra.mxu1 %v272_v37  ;;  %800 = vmatprep.subr.mxu0 %v684_v40 }
  0x27   : > { %835 = vmatprep.subr.mxu1 %v271_v41  ;;  %801 = vmatpush3.msra.mxu0 %v684_v40 }
  0x28   : > { %836 = vmatpush3.msra.mxu1 %v271_v41  ;;  %802 = vmatprep.subr.mxu0 %v683_v45 }
  0x29   : > { %837 = vmatprep.subr.mxu1 %v270_v46  ;;  %803 = vmatpush3.msra.mxu0 %v683_v45 }
  0x2a   : > { %838 = vmatpush3.msra.mxu1 %v270_v46  ;;  %804 = vmatprep.subr.mxu0 %v682_v48 }
  0x2b   : > { %839 = vmatprep.subr.mxu1 %v269_v49  ;;  %805 = vmatpush3.msra.mxu0 %v682_v48 }
  0x2c   : > { %806 = vmatprep.mubr.f32.mxu0 %v307_v52  ;;  %840 = vmatpush3.msra.mxu1 %v269_v49 }
  0x2d   : > { %841 = vmatprep.mubr.msk.f32.mxu1 %vm698_vm3, %v261_v32  ;;  %807 = vmatmul.mubr.f32.vlgmr.msra.gmra.mxu0 %v309_v53 }
  0x2e   : > { %842 = vmatmul.mubr.f32.vlgmr.msra.gmra.mxu1 %v1026_v38  ;;  %844 = vmatprep.subr.mxu0 %v715_v54 }
  0x2f   : > { %876 = vmatprep.mubr.f32.mxu0 %v482_v55  ;;  %845 = vmatpush3.msra.mxu0 %v715_v54 }
  0x30   : > { %846 = vmatprep.subr.mxu0 %v714_v56 }
  0x31   : > { %847 = vmatpush3.msra.mxu0 %v714_v56 }
  0x32   : > { %848 = vmatprep.subr.mxu0 %v713_v57 }
  0x33   : > { %849 = vmatpush3.msra.mxu0 %v713_v57 }
  0x34   : > { %850 = vmatprep.subr.mxu0 %v712_v58 }
  0x35   : > { %851 = vmatpush3.msra.mxu0 %v712_v58 }
  0x36   : > { %852 = vmatprep.subr.mxu0 %v711_v59 }
  0x37   : > { %853 = vmatpush3.msra.mxu0 %v711_v59 }
  0x38   : > { %854 = vmatprep.subr.mxu0 %v710_v60 }
  0x39   : > { %855 = vmatpush3.msra.mxu0 %v710_v60 }
  0x3a   : > { %856 = vmatprep.subr.mxu0 %v709_v61 }
  0x3b   : > { %857 = vmatpush3.msra.mxu0 %v709_v61 }
  0x3c   : > { %858 = vmatprep.subr.mxu0 %v708_v62 }
  0x3d   : > { %859 = vmatpush3.msra.mxu0 %v708_v62 }
  0x3e   : > { %860 = vmatprep.subr.mxu0 %v707_v63 }
  0x3f   : > { %861 = vmatpush3.msra.mxu0 %v707_v63 }
  0x40   : > { %862 = vmatprep.subr.mxu0 %v706_v0 }
  0x41   : > { %863 = vmatpush3.msra.mxu0 %v706_v0 }
  0x42   : > { %864 = vmatprep.subr.mxu0 %v705_v1 }
  0x43   : > { %865 = vmatpush3.msra.mxu0 %v705_v1 }
  0x44   : > { %866 = vmatprep.subr.mxu0 %v704_v2 }
  0x45   : > { %867 = vmatpush3.msra.mxu0 %v704_v2 }
  0x46   : > { %868 = vmatprep.subr.mxu0 %v703_v3 }
  0x47   : > { %869 = vmatpush3.msra.mxu0 %v703_v3 }
  0x48   : > { %870 = vmatprep.subr.mxu0 %v702_v4 }
  0x49   : > { %871 = vmatpush3.msra.mxu0 %v702_v4 }
  0x4a   : > { %872 = vmatprep.subr.mxu0 %v701_v5 }
  0x4b   : > { %873 = vmatpush3.msra.mxu0 %v701_v5 }
  0x4c   : > { %874 = vmatprep.subr.mxu0 %v700_v7 }
  0x4d   : > { %875 = vmatpush3.msra.mxu0 %v700_v7 }
  0x4e   : > { %877 = vmatmul.mubr.f32.vlgmr.msra.gmra.mxu0 %v484_v8 }
  0xed   : > { %v808_v9 = vpop.f32.mrf.mxu0 }
  0xee   : > { %v843_v10 = vpop.f32.mrf.mxu1 }
  0xef   : > { %v378_v11 = vpop.f32.mrf.mxu0  ;;  %v459_v13 = vadd.f32 %v843_v10, %v808_v9 }
  0xf0   : > { %v453_v12 = vpop.f32.mrf.mxu1 }
  0xf1   : > { %v454_v15 = vadd.f32 %v453_v12, %v378_v11 }
 0x10e   : > { %v878_v14 = vpop.f32.mrf.mxu0 }
 0x10f   : > { %v563_v16 = vadd.f32 %v878_v14, %v459_v13 }
 0x110   : > { %v553_v17 = vpop.f32.mrf.mxu0 }
 0x111   : > { %583 = vst [vmem:[%s231_s13 + $0x8] sm:$0xff] %v563_v16  ;;  %v562_v18 = vadd.f32 %v553_v17, %v454_v15  ;;  %v572_v19 = vmul.f32 %v563_v16, %v563_v16 }
 0x113   : > { %v564_v20 = vadd.f32 %v563_v16, %v562_v18  ;;  %v571_v21 = vmul.f32 %v562_v18, %v562_v18  ;;  %582 = vst [vmem:[%s231_s13] sm:$0xff] %v562_v18 }
 0x115   : > { %v565_v22 = vrot.slane %v564_v20, 4  ;;  %v573_v23 = vadd.f32 %v572_v19, %v571_v21 }
 0x117   : > { %v566_v24 = vadd.f32 %v565_v22, %v564_v20  ;;  %v574_v25 = vrot.slane %v573_v23, 4 }
 0x119   : > { %v567_v26 = vrot.slane %v566_v24, 2  ;;  %v575_v27 = vadd.f32 %v574_v25, %v573_v23 }
 0x11b   : > { %v568_v28 = vadd.f32 %v567_v26, %v566_v24  ;;  %v576_v29 = vrot.slane %v575_v27, 2 }
 0x11d   : > { %v569_v30 = vrot.slane %v568_v28, 1  ;;  %v577_v31 = vadd.f32 %v576_v29, %v575_v27 }
 0x11f   : > { %v578_v32 = vrot.slane %v577_v31, 1  ;;  %v570_v33 = vadd.f32 %v569_v30, %v568_v28 }
 0x121   : > { %v579_v34 = vadd.f32 %v578_v32, %v577_v31 }
 0x123   : > { %v580_v35 = vsel %vm260_vm0, %v570_v33, %v579_v34 }
 0x124   : > { %581 = vst [vmem:[%s235_s16] sm:$0x3] %v580_v35 }
 0x125 PF: > { %s16_s18 = sadd.s32 1, %s893_s18  }
 0x126   : > { %p13_p4 = scmp.ge.s32.totalorder %s16_s18, 4  }
 0x128   :  { %15 = sbr.rel (!%p13_p4) target bundleno = 1 (0x1), region = 80 }

// kernel: conv_block_forward.3
= control target key start
LH: loop header
LB: loop body
LE: loop exit
PB: predicated region body
PF: predicated region fallthrough
CT: control target
= control target key end

     0   :  { %s1394_s18 = smov 0   ;;  %s1738_s0 = inlined_call_operand.vmem [shape: f32[2,18,128], index: 0, kind: input, shape index: {}]   ;;  %s1739_s1 = inlined_call_operand.vmem [shape: f32[3,128,128], index: 1, kind: input, shape index: {}]   ;;  %s1740_s2 = inlined_call_operand.vmem [shape: f32[3,128,128], index: 2, kind: input, shape index: {}]   ;;  %s1741_s3 = inlined_call_operand.vmem [shape: f32[2,16,128], index: 3, kind: output, shape index: {0}]   ;;  %s1742_s4 = inlined_call_operand.vmem [shape: f32[2,2,128], index: 4, kind: output, shape index: {1}]   ;;  %s1743_s5 = inlined_call_operand.vmem [shape: f32[2,16,128], index: 5, kind: output, shape index: {2}]  }
   0x1 LB: > { %s950_s19 = sadd.s32 4294967295, %s1362_s18   ;;  %p954_p0 = scmp.ge.s32.totalorder %s1362_s18, 1  ;;  %s1362_s18 = sphi %s1394_s18, %s16_s18  }
   0x2   : > { %p192_p1 = scmp.lt.s32.totalorder %s1362_s18, 3 }
   0x4   : > { %p193_p2 = pnand %p954_p0, %p192_p1 }
   0x5   : > { %p229_p3 = scmp.lt.s32.totalorder (!%p193_p2), %s950_s19, 1 }
   0x6   : > { %196 = sbr.rel (%p193_p2) target bundleno = 328 (0x148), region = 32 }
   0xb   : > { %v976_v0 = vld [vmem:[%s1739_s1 + $0xf8] sm:$0xff]  ;;  %v975_v2 = vld [vmem:[%s1739_s1 + $0xf0] sm:$0xff]  ;;  %v974_v4 = vld [vmem:[%s1739_s1 + $0xe8] sm:$0xff]  ;;  %s1745_s19 = smov (!%p229_p3, %s950_s19), 1  ;;  %vm824_vm0 = vcmask 1040384  }
   0xc   : > { %v265_v1 = vld [vmem:[%s1739_s1 + $0x78] sm:$0xff]  ;;  %1137 = vmatprep.subr.mxu0 %v976_v0  ;;  %v264_v3 = vld [vmem:[%s1739_s1 + $0x70] sm:$0xff]  ;;  %v263_v5 = vld [vmem:[%s1739_s1 + $0x68] sm:$0xff]  ;;  %s1347_s26 = smul.u32 24, %s1745_s19  ;;  %s1027_s13 = sshll.u32 %s1745_s19, 4 }
   0xd   : > { %1172 = vmatprep.subr.mxu1 %v265_v1  ;;  %1138 = vmatpush3.msra.mxu0 %v976_v0  ;;  %v973_v6 = vld [vmem:[%s1739_s1 + $0xe0] sm:$0xff]  ;;  %v972_v8 = vld [vmem:[%s1739_s1 + $0xd8] sm:$0xff]  ;;  %v971_v10 = vld [vmem:[%s1739_s1 + $0xd0] sm:$0xff]  ;;  %s238_s15 = scalar_lea.vmem %s1741_s3, %s1027_s13  ;;  %s247_s20 = scalar_lea.vmem %s1743_s5, %s1027_s13 }
   0xe   : > { %1173 = vmatpush3.msra.mxu1 %v265_v1  ;;  %1139 = vmatprep.subr.mxu0 %v975_v2  ;;  %v262_v7 = vld [vmem:[%s1739_s1 + $0x60] sm:$0xff]  ;;  %v261_v9 = vld [vmem:[%s1739_s1 + $0x58] sm:$0xff]  ;;  %v260_v11 = vld [vmem:[%s1739_s1 + $0x50] sm:$0xff]  ;;  %s1502_s12 = scalar_lea.vmem %s1738_s0, %s1347_s26  ;;  %s958_s21 = sshll.u32 %s1745_s19, 1 }
   0xf   : > { %1174 = vmatprep.subr.mxu1 %v264_v3  ;;  %1140 = vmatpush3.msra.mxu0 %v975_v2  ;;  %v970_v12 = vld [vmem:[%s1739_s1 + $0xc8] sm:$0xff]  ;;  %v969_v14 = vld [vmem:[%s1739_s1 + $0xc0] sm:$0xff]  ;;  %v968_v16 = vld [vmem:[%s1739_s1 + $0xb8] sm:$0xff]  ;;  %s242_s24 = scalar_lea.vmem %s1742_s4, %s958_s21 }
  0x10   : > { %1175 = vmatpush3.msra.mxu1 %v264_v3  ;;  %1141 = vmatprep.subr.mxu0 %v974_v4  ;;  %v259_v13 = vld [vmem:[%s1739_s1 + $0x48] sm:$0xff]  ;;  %v258_v15 = vld [vmem:[%s1739_s1 + $0x40] sm:$0xff]  ;;  %v257_v17 = vld [vmem:[%s1739_s1 + $0x38] sm:$0xff] }
  0x11   : > { %1176 = vmatprep.subr.mxu1 %v263_v5  ;;  %1142 = vmatpush3.msra.mxu0 %v974_v4  ;;  %v967_v18 = vld [vmem:[%s1739_s1 + $0xb0] sm:$0xff]  ;;  %v966_v20 = vld [vmem:[%s1739_s1 + $0xa8] sm:$0xff]  ;;  %v965_v22 = vld [vmem:[%s1739_s1 + $0xa0] sm:$0xff] }
  0x12   : > { %1177 = vmatpush3.msra.mxu1 %v263_v5  ;;  %1143 = vmatprep.subr.mxu0 %v973_v6  ;;  %v256_v19 = vld [vmem:[%s1739_s1 + $0x30] sm:$0xff]  ;;  %v255_v21 = vld [vmem:[%s1739_s1 + $0x28] sm:$0xff]  ;;  %v254_v23 = vld [vmem:[%s1739_s1 + $0x20] sm:$0xff] }
  0x13   : > { %1178 = vmatprep.subr.mxu1 %v262_v7  ;;  %1144 = vmatpush3.msra.mxu0 %v973_v6  ;;  %v964_v24 = vld [vmem:[%s1739_s1 + $0x98] sm:$0xff]  ;;  %v963_v26 = vld [vmem:[%s1739_s1 + $0x90] sm:$0xff]  ;;  %v962_v28 = vld [vmem:[%s1739_s1 + $0x88] sm:$0xff] }
  0x14   : > { %1179 = vmatpush3.msra.mxu1 %v262_v7  ;;  %1145 = vmatprep.subr.mxu0 %v972_v8  ;;  %v253_v25 = vld [vmem:[%s1739_s1 + $0x18] sm:$0xff]  ;;  %v252_v27 = vld [vmem:[%s1739_s1 + $0x10] sm:$0xff]  ;;  %v251_v29 = vld [vmem:[%s1739_s1 + $0x8] sm:$0xff] }
  0x15   : > { %1180 = vmatprep.subr.mxu1 %v261_v9  ;;  %1146 = vmatpush3.msra.mxu0 %v972_v8  ;;  %v961_v30 = vld [vmem:[%s1739_s1 + $0x80] sm:$0xff]  ;;  %v1517_v34 = vld [vmem:[%s1502_s12 + $0x9] sm:$0xff]  ;;  %v992_v36 = vld [vmem:[%s1740_s2 + $0xf8] sm:$0xff] }
  0x16   : > { %1181 = vmatpush3.msra.mxu1 %v261_v9  ;;  %1147 = vmatprep.subr.mxu0 %v971_v10  ;;  %v250_v31 = vld [vmem:[%s1739_s1] sm:$0xff]  ;;  %v1520_v35 = vld [vmem:[%s1502_s12 + $0x8] sm:$0xff]  ;;  %v281_v37 = vld [vmem:[%s1740_s2 + $0x78] sm:$0xff] }
  0x17   : > { %1182 = vmatprep.subr.mxu1 %v260_v11  ;;  %1148 = vmatpush3.msra.mxu0 %v971_v10  ;;  %v1511_v32 = vld [vmem:[%s1502_s12 + $0x1] sm:$0xff]  ;;  %v991_v38 = vld [vmem:[%s1740_s2 + $0xf0] sm:$0xff]  ;;  %v988_v44 = vld [vmem:[%s1740_s2 + $0xd8] sm:$0xff] }
  0x18   : > { %1183 = vmatpush3.msra.mxu1 %v260_v11  ;;  %1149 = vmatprep.subr.mxu0 %v970_v12  ;;  %v1514_v33 = vld [vmem:[%s1502_s12] sm:$0xff]  ;;  %v280_v39 = vld [vmem:[%s1740_s2 + $0x70] sm:$0xff]  ;;  %v990_v40 = vld [vmem:[%s1740_s2 + $0xe8] sm:$0xff] }
  0x19   : > { %1184 = vmatprep.subr.mxu1 %v259_v13  ;;  %1150 = vmatpush3.msra.mxu0 %v970_v12  ;;  %v279_v41 = vld [vmem:[%s1740_s2 + $0x68] sm:$0xff]  ;;  %v989_v42 = vld [vmem:[%s1740_s2 + $0xe0] sm:$0xff]  ;;  %v277_v45 = vld [vmem:[%s1740_s2 + $0x58] sm:$0xff] }
  0x1a   : > { %1185 = vmatpush3.msra.mxu1 %v259_v13  ;;  %1151 = vmatprep.subr.mxu0 %v969_v14  ;;  %v278_v43 = vld [vmem:[%s1740_s2 + $0x60] sm:$0xff]  ;;  %v987_v46 = vld [vmem:[%s1740_s2 + $0xd0] sm:$0xff]  ;;  %v986_v48 = vld [vmem:[%s1740_s2 + $0xc8] sm:$0xff] }
  0x1b   : > { %1186 = vmatprep.subr.mxu1 %v258_v15  ;;  %1152 = vmatpush3.msra.mxu0 %v969_v14  ;;  %v276_v47 = vld [vmem:[%s1740_s2 + $0x50] sm:$0xff]  ;;  %v275_v49 = vld [vmem:[%s1740_s2 + $0x48] sm:$0xff]  ;;  %v985_v50 = vld [vmem:[%s1740_s2 + $0xc0] sm:$0xff] }
  0x1c   : > { %1187 = vmatpush3.msra.mxu1 %v258_v15  ;;  %1153 = vmatprep.subr.mxu0 %v968_v16  ;;  %v274_v51 = vld [vmem:[%s1740_s2 + $0x40] sm:$0xff]  ;;  %v984_v52 = vld [vmem:[%s1740_s2 + $0xb8] sm:$0xff]  ;;  %v983_v54 = vld [vmem:[%s1740_s2 + $0xb0] sm:$0xff] }
  0x1d   : > { %1188 = vmatprep.subr.mxu1 %v257_v17  ;;  %1154 = vmatpush3.msra.mxu0 %v968_v16  ;;  %v273_v53 = vld [vmem:[%s1740_s2 + $0x38] sm:$0xff]  ;;  %v272_v55 = vld [vmem:[%s1740_s2 + $0x30] sm:$0xff]  ;;  %v982_v56 = vld [vmem:[%s1740_s2 + $0xa8] sm:$0xff] }
  0x1e   : > { %1189 = vmatpush3.msra.mxu1 %v257_v17  ;;  %1155 = vmatprep.subr.mxu0 %v967_v18  ;;  %v271_v57 = vld [vmem:[%s1740_s2 + $0x28] sm:$0xff]  ;;  %v981_v58 = vld [vmem:[%s1740_s2 + $0xa0] sm:$0xff]  ;;  %v980_v60 = vld [vmem:[%s1740_s2 + $0x98] sm:$0xff] }
  0x1f   : > { %1190 = vmatprep.subr.mxu1 %v256_v19  ;;  %1156 = vmatpush3.msra.mxu0 %v967_v18  ;;  %v270_v59 = vld [vmem:[%s1740_s2 + $0x20] sm:$0xff]  ;;  %v269_v61 = vld [vmem:[%s1740_s2 + $0x18] sm:$0xff]  ;;  %v979_v62 = vld [vmem:[%s1740_s2 + $0x90] sm:$0xff] }
  0x20   : > { %1191 = vmatpush3.msra.mxu1 %v256_v19  ;;  %1157 = vmatprep.subr.mxu0 %v966_v20  ;;  %v268_v63 = vld [vmem:[%s1740_s2 + $0x10] sm:$0xff]  ;;  %v978_v0 = vld [vmem:[%s1740_s2 + $0x88] sm:$0xff]  ;;  %v977_v2 = vld [vmem:[%s1740_s2 + $0x80] sm:$0xff] }
  0x21   : > { %1192 = vmatprep.subr.mxu1 %v255_v21  ;;  %1158 = vmatpush3.msra.mxu0 %v966_v20  ;;  %v267_v1 = vld [vmem:[%s1740_s2 + $0x8] sm:$0xff]  ;;  %v266_v3 = vld [vmem:[%s1740_s2] sm:$0xff]  ;;  %v1008_v4 = vld [vmem:[%s1739_s1 + $0x178] sm:$0xff] }
  0x22   : > { %1193 = vmatpush3.msra.mxu1 %v255_v21  ;;  %1159 = vmatprep.subr.mxu0 %v965_v22  ;;  %v1024_v5 = vld [vmem:[%s1740_s2 + $0x178] sm:$0xff]  ;;  %v1007_v6 = vld [vmem:[%s1739_s1 + $0x170] sm:$0xff]  ;;  %v1006_v8 = vld [vmem:[%s1739_s1 + $0x168] sm:$0xff] }
  0x23   : > { %1194 = vmatprep.subr.mxu1 %v254_v23  ;;  %1160 = vmatpush3.msra.mxu0 %v965_v22  ;;  %v1023_v7 = vld [vmem:[%s1740_s2 + $0x170] sm:$0xff]  ;;  %v1022_v9 = vld [vmem:[%s1740_s2 + $0x168] sm:$0xff]  ;;  %v1005_v10 = vld [vmem:[%s1739_s1 + $0x160] sm:$0xff] }
  0x24   : > { %1195 = vmatpush3.msra.mxu1 %v254_v23  ;;  %1161 = vmatprep.subr.mxu0 %v964_v24  ;;  %v1021_v11 = vld [vmem:[%s1740_s2 + $0x160] sm:$0xff]  ;;  %v1004_v12 = vld [vmem:[%s1739_s1 + $0x158] sm:$0xff]  ;;  %v1003_v14 = vld [vmem:[%s1739_s1 + $0x150] sm:$0xff] }
  0x25   : > { %1196 = vmatprep.subr.mxu1 %v253_v25  ;;  %1162 = vmatpush3.msra.mxu0 %v964_v24  ;;  %v1020_v13 = vld [vmem:[%s1740_s2 + $0x158] sm:$0xff]  ;;  %v1019_v15 = vld [vmem:[%s1740_s2 + $0x150] sm:$0xff]  ;;  %v1002_v16 = vld [vmem:[%s1739_s1 + $0x148] sm:$0xff] }
  0x26   : > { %1197 = vmatpush3.msra.mxu1 %v253_v25  ;;  %1163 = vmatprep.subr.mxu0 %v963_v26  ;;  %v1018_v17 = vld [vmem:[%s1740_s2 + $0x148] sm:$0xff]  ;;  %v1001_v18 = vld [vmem:[%s1739_s1 + $0x140] sm:$0xff]  ;;  %v1000_v20 = vld [vmem:[%s1739_s1 + $0x138] sm:$0xff] }
  0x27   : > { %1198 = vmatprep.subr.mxu1 %v252_v27  ;;  %1164 = vmatpush3.msra.mxu0 %v963_v26  ;;  %v1017_v19 = vld [vmem:[%s1740_s2 + $0x140] sm:$0xff]  ;;  %v1016_v21 = vld [vmem:[%s1740_s2 + $0x138] sm:$0xff]  ;;  %v999_v22 = vld [vmem:[%s1739_s1 + $0x130] sm:$0xff] }
  0x28   : > { %1199 = vmatpush3.msra.mxu1 %v252_v27  ;;  %1165 = vmatprep.subr.mxu0 %v962_v28  ;;  %v1015_v23 = vld [vmem:[%s1740_s2 + $0x130] sm:$0xff]  ;;  %v998_v24 = vld [vmem:[%s1739_s1 + $0x128] sm:$0xff]  ;;  %v997_v26 = vld [vmem:[%s1739_s1 + $0x120] sm:$0xff] }
  0x29   : > { %1200 = vmatprep.subr.mxu1 %v251_v29  ;;  %1166 = vmatpush3.msra.mxu0 %v962_v28  ;;  %v1014_v25 = vld [vmem:[%s1740_s2 + $0x128] sm:$0xff]  ;;  %v1013_v27 = vld [vmem:[%s1740_s2 + $0x120] sm:$0xff]  ;;  %v996_v28 = vld [vmem:[%s1739_s1 + $0x118] sm:$0xff] }
  0x2a   : > { %1201 = vmatpush3.msra.mxu1 %v251_v29  ;;  %1167 = vmatprep.subr.mxu0 %v961_v30  ;;  %v1012_v29 = vld [vmem:[%s1740_s2 + $0x118] sm:$0xff] }
  0x2b   : > { %1202 = vmatprep.subr.mxu1 %v250_v31  ;;  %1168 = vmatpush3.msra.mxu0 %v961_v30  ;;  %v995_v30 = vld [vmem:[%s1739_s1 + $0x110] sm:$0xff] }
  0x2c   : > { %1169 = vmatprep.mubr.f32.mxu0 %v1511_v32  ;;  %1203 = vmatpush3.msra.mxu1 %v250_v31  ;;  %v1011_v31 = vld [vmem:[%s1740_s2 + $0x110] sm:$0xff] }
  0x2d   : > { %1204 = vmatprep.mubr.f32.mxu1 %v1514_v33  ;;  %1170 = vmatmul.mubr.f32.vlgmr.msra.gmra.mxu0 %v1517_v34 }
  0x2e   : > { %1205 = vmatmul.mubr.f32.vlgmr.msra.gmra.mxu1 %v1520_v35  ;;  %1207 = vmatprep.subr.mxu0 %v992_v36 }
  0x2f   : > { %1242 = vmatprep.subr.mxu1 %v281_v37  ;;  %1208 = vmatpush3.msra.mxu0 %v992_v36  ;;  %v618_v36 = vld [vmem:[%s1502_s12 + $0x2] sm:$0xff] }
  0x30   : > { %1243 = vmatpush3.msra.mxu1 %v281_v37  ;;  %1209 = vmatprep.subr.mxu0 %v991_v38  ;;  %v619_v37 = vld [vmem:[%s1502_s12 + $0xa] sm:$0xff] }
  0x31   : > { %1244 = vmatprep.subr.mxu1 %v280_v39  ;;  %1210 = vmatpush3.msra.mxu0 %v991_v38 }
  0x32   : > { %1245 = vmatpush3.msra.mxu1 %v280_v39  ;;  %1211 = vmatprep.subr.mxu0 %v990_v40 }
  0x33   : > { %1246 = vmatprep.subr.mxu1 %v279_v41  ;;  %1212 = vmatpush3.msra.mxu0 %v990_v40 }
  0x34   : > { %1247 = vmatpush3.msra.mxu1 %v279_v41  ;;  %1213 = vmatprep.subr.mxu0 %v989_v42 }
  0x35   : > { %1248 = vmatprep.subr.mxu1 %v278_v43  ;;  %1214 = vmatpush3.msra.mxu0 %v989_v42 }
  0x36   : > { %1249 = vmatpush3.msra.mxu1 %v278_v43  ;;  %1215 = vmatprep.subr.mxu0 %v988_v44 }
  0x37   : > { %1250 = vmatprep.subr.mxu1 %v277_v45  ;;  %1216 = vmatpush3.msra.mxu0 %v988_v44 }
  0x38   : > { %1251 = vmatpush3.msra.mxu1 %v277_v45  ;;  %1217 = vmatprep.subr.mxu0 %v987_v46 }
  0x39   : > { %1252 = vmatprep.subr.mxu1 %v276_v47  ;;  %1218 = vmatpush3.msra.mxu0 %v987_v46 }
  0x3a   : > { %1253 = vmatpush3.msra.mxu1 %v276_v47  ;;  %1219 = vmatprep.subr.mxu0 %v986_v48 }
  0x3b   : > { %1254 = vmatprep.subr.mxu1 %v275_v49  ;;  %1220 = vmatpush3.msra.mxu0 %v986_v48 }
  0x3c   : > { %1255 = vmatpush3.msra.mxu1 %v275_v49  ;;  %1221 = vmatprep.subr.mxu0 %v985_v50 }
  0x3d   : > { %1256 = vmatprep.subr.mxu1 %v274_v51  ;;  %1222 = vmatpush3.msra.mxu0 %v985_v50 }
  0x3e   : > { %1257 = vmatpush3.msra.mxu1 %v274_v51  ;;  %1223 = vmatprep.subr.mxu0 %v984_v52 }
  0x3f   : > { %1258 = vmatprep.subr.mxu1 %v273_v53  ;;  %1224 = vmatpush3.msra.mxu0 %v984_v52 }
  0x40   : > { %1259 = vmatpush3.msra.mxu1 %v273_v53  ;;  %1225 = vmatprep.subr.mxu0 %v983_v54 }
  0x41   : > { %1260 = vmatprep.subr.mxu1 %v272_v55  ;;  %1226 = vmatpush3.msra.mxu0 %v983_v54 }
  0x42   : > { %1261 = vmatpush3.msra.mxu1 %v272_v55  ;;  %1227 = vmatprep.subr.mxu0 %v982_v56 }
  0x43   : > { %1262 = vmatprep.subr.mxu1 %v271_v57  ;;  %1228 = vmatpush3.msra.mxu0 %v982_v56 }
  0x44   : > { %1263 = vmatpush3.msra.mxu1 %v271_v57  ;;  %1229 = vmatprep.subr.mxu0 %v981_v58 }
  0x45   : > { %1264 = vmatprep.subr.mxu1 %v270_v59  ;;  %1230 = vmatpush3.msra.mxu0 %v981_v58 }
  0x46   : > { %1265 = vmatpush3.msra.mxu1 %v270_v59  ;;  %1231 = vmatprep.subr.mxu0 %v980_v60 }
  0x47   : > { %1266 = vmatprep.subr.mxu1 %v269_v61  ;;  %1232 = vmatpush3.msra.mxu0 %v980_v60 }
  0x48   : > { %1267 = vmatpush3.msra.mxu1 %v269_v61  ;;  %1233 = vmatprep.subr.mxu0 %v979_v62 }
  0x49   : > { %1268 = vmatprep.subr.mxu1 %v268_v63  ;;  %1234 = vmatpush3.msra.mxu0 %v979_v62 }
  0x4a   : > { %1269 = vmatpush3.msra.mxu1 %v268_v63  ;;  %1235 = vmatprep.subr.mxu0 %v978_v0 }
  0x4b   : > { %1270 = vmatprep.subr.mxu1 %v267_v1  ;;  %1236 = vmatpush3.msra.mxu0 %v978_v0 }
  0x4c   : > { %1271 = vmatpush3.msra.mxu1 %v267_v1  ;;  %1237 = vmatprep.subr.mxu0 %v977_v2 }
  0x4d   : > { %1272 = vmatprep.subr.mxu1 %v266_v3  ;;  %1238 = vmatpush3.msra.mxu0 %v977_v2 }
  0x4e   : > { %1239 = vmatprep.mubr.f32.mxu0 %v1511_v32  ;;  %1273 = vmatpush3.msra.mxu1 %v266_v3  ;;  %v994_v32 = vld [vmem:[%s1739_s1 + $0x108] sm:$0xff] }
  0x4f   : > { %1274 = vmatprep.mubr.f32.mxu1 %v1514_v33  ;;  %1240 = vmatmul.mubr.f32.vlgmr.msra.gmra.mxu0 %v1517_v34  ;;  %v1010_v33 = vld [vmem:[%s1740_s2 + $0x108] sm:$0xff]  ;;  %v993_v34 = vld [vmem:[%s1739_s1 + $0x100] sm:$0xff] }
  0x50   : > { %1275 = vmatmul.mubr.f32.vlgmr.msra.gmra.mxu1 %v1520_v35  ;;  %1277 = vmatprep.subr.mxu0 %v1008_v4  ;;  %v1009_v35 = vld [vmem:[%s1740_s2 + $0x100] sm:$0xff] }
  0x51   : > { %1312 = vmatprep.subr.mxu1 %v1024_v5  ;;  %1278 = vmatpush3.msra.mxu0 %v1008_v4 }
  0x52   : > { %1313 = vmatpush3.msra.mxu1 %v1024_v5  ;;  %1279 = vmatprep.subr.mxu0 %v1007_v6 }
  0x53   : > { %1314 = vmatprep.subr.mxu1 %v1023_v7  ;;  %1280 = vmatpush3.msra.mxu0 %v1007_v6 }
  0x54   : > { %1315 = vmatpush3.msra.mxu1 %v1023_v7  ;;  %1281 = vmatprep.subr.mxu0 %v1006_v8 }
  0x55   : > { %1316 = vmatprep.subr.mxu1 %v1022_v9  ;;  %1282 = vmatpush3.msra.mxu0 %v1006_v8 }
  0x56   : > { %1317 = vmatpush3.msra.mxu1 %v1022_v9  ;;  %1283 = vmatprep.subr.mxu0 %v1005_v10 }
  0x57   : > { %1318 = vmatprep.subr.mxu1 %v1021_v11  ;;  %1284 = vmatpush3.msra.mxu0 %v1005_v10 }
  0x58   : > { %1319 = vmatpush3.msra.mxu1 %v1021_v11  ;;  %1285 = vmatprep.subr.mxu0 %v1004_v12 }
  0x59   : > { %1320 = vmatprep.subr.mxu1 %v1020_v13  ;;  %1286 = vmatpush3.msra.mxu0 %v1004_v12 }
  0x5a   : > { %1321 = vmatpush3.msra.mxu1 %v1020_v13  ;;  %1287 = vmatprep.subr.mxu0 %v1003_v14 }
  0x5b   : > { %1322 = vmatprep.subr.mxu1 %v1019_v15  ;;  %1288 = vmatpush3.msra.mxu0 %v1003_v14 }
  0x5c   : > { %1323 = vmatpush3.msra.mxu1 %v1019_v15  ;;  %1289 = vmatprep.subr.mxu0 %v1002_v16 }
  0x5d   : > { %1324 = vmatprep.subr.mxu1 %v1018_v17  ;;  %1290 = vmatpush3.msra.mxu0 %v1002_v16 }
  0x5e   : > { %1325 = vmatpush3.msra.mxu1 %v1018_v17  ;;  %1291 = vmatprep.subr.mxu0 %v1001_v18 }
  0x5f   : > { %1326 = vmatprep.subr.mxu1 %v1017_v19  ;;  %1292 = vmatpush3.msra.mxu0 %v1001_v18 }
  0x60   : > { %1327 = vmatpush3.msra.mxu1 %v1017_v19  ;;  %1293 = vmatprep.subr.mxu0 %v1000_v20 }
  0x61   : > { %1328 = vmatprep.subr.mxu1 %v1016_v21  ;;  %1294 = vmatpush3.msra.mxu0 %v1000_v20 }
  0x62   : > { %1329 = vmatpush3.msra.mxu1 %v1016_v21  ;;  %1295 = vmatprep.subr.mxu0 %v999_v22 }
  0x63   : > { %1330 = vmatprep.subr.mxu1 %v1015_v23  ;;  %1296 = vmatpush3.msra.mxu0 %v999_v22 }
  0x64   : > { %1331 = vmatpush3.msra.mxu1 %v1015_v23  ;;  %1297 = vmatprep.subr.mxu0 %v998_v24 }
  0x65   : > { %1332 = vmatprep.subr.mxu1 %v1014_v25  ;;  %1298 = vmatpush3.msra.mxu0 %v998_v24 }
  0x66   : > { %1333 = vmatpush3.msra.mxu1 %v1014_v25  ;;  %1299 = vmatprep.subr.mxu0 %v997_v26 }
  0x67   : > { %1334 = vmatprep.subr.mxu1 %v1013_v27  ;;  %1300 = vmatpush3.msra.mxu0 %v997_v26 }
  0x68   : > { %1335 = vmatpush3.msra.mxu1 %v1013_v27  ;;  %1301 = vmatprep.subr.mxu0 %v996_v28 }
  0x69   : > { %1336 = vmatprep.subr.mxu1 %v1012_v29  ;;  %1302 = vmatpush3.msra.mxu0 %v996_v28 }
  0x6a   : > { %1337 = vmatpush3.msra.mxu1 %v1012_v29  ;;  %1303 = vmatprep.subr.mxu0 %v995_v30 }
  0x6b   : > { %1338 = vmatprep.subr.mxu1 %v1011_v31  ;;  %1304 = vmatpush3.msra.mxu0 %v995_v30 }
  0x6c   : > { %1339 = vmatpush3.msra.mxu1 %v1011_v31  ;;  %1305 = vmatprep.subr.mxu0 %v994_v32 }
  0x6d   : > { %1340 = vmatprep.subr.mxu1 %v1010_v33  ;;  %1306 = vmatpush3.msra.mxu0 %v994_v32 }
  0x6e   : > { %1341 = vmatpush3.msra.mxu1 %v1010_v33  ;;  %1307 = vmatprep.subr.mxu0 %v993_v34 }
  0x6f   : > { %1342 = vmatprep.subr.mxu1 %v1009_v35  ;;  %1308 = vmatpush3.msra.mxu0 %v993_v34 }
  0x70   : > { %1309 = vmatprep.mubr.f32.mxu0 %v618_v36  ;;  %1343 = vmatpush3.msra.mxu1 %v1009_v35 }
  0x71   : > { %1344 = vmatprep.mubr.f32.mxu1 %v618_v36  ;;  %1310 = vmatmul.mubr.f32.vlgmr.msra.gmra.mxu0 %v619_v37 }
  0x72   : > { %1345 = vmatmul.mubr.f32.vlgmr.msra.gmra.mxu1 %v619_v37 }
  0xed   : > { %v1171_v38 = vpop.f32.mrf.mxu0 }
  0xee   : > { %v1206_v39 = vpop.f32.mrf.mxu1 }
  0xef   : > { %v367_v40 = vpop.f32.mrf.mxu0  ;;  %v448_v46 = vadd.f32 %v1206_v39, %v1171_v38 }
  0xf0   : > { %v442_v41 = vpop.f32.mrf.mxu1 }
  0xf1   : > { %v443_v50 = vadd.f32 %v442_v41, %v367_v40 }
 0x10f   : > { %v1241_v42 = vpop.f32.mrf.mxu0 }
 0x110   : > { %v1276_v43 = vpop.f32.mrf.mxu1 }
 0x111   : > { %v534_v44 = vpop.f32.mrf.mxu0  ;;  %v615_v47 = vadd.f32 %v1276_v43, %v1241_v42 }
 0x112   : > { %v609_v45 = vpop.f32.mrf.mxu1 }
 0x113   : > { %v610_v51 = vadd.f32 %v609_v45, %v534_v44 }
 0x131   : > { %v1311_v48 = vpop.f32.mrf.mxu0 }
 0x132   : > { %v1346_v49 = vpop.f32.mrf.mxu1  ;;  %v713_v52 = vadd.f32 %v1311_v48, %v448_v46 }
 0x133   : > { %v807_v53 = vadd.f32 %v1346_v49, %v615_v47  ;;  %v703_v54 = vpop.f32.mrf.mxu0 }
 0x134   : > { %v797_v55 = vpop.f32.mrf.mxu1  ;;  %828 = vst [vmem:[%s238_s15 + $0x8] sm:$0xff] %v713_v52  ;;  %v712_v56 = vadd.f32 %v703_v54, %v443_v50  ;;  %v816_v58 = vmul.f32 %v713_v52, %v713_v52 }
 0x135   : > { %830 = vst [vmem:[%s247_s20 + $0x8] sm:$0xff] %v807_v53  ;;  %v806_v57 = vadd.f32 %v797_v55, %v610_v51 }
 0x136   : > { %v808_v59 = vadd.f32 %v713_v52, %v712_v56  ;;  %v815_v60 = vmul.f32 %v712_v56, %v712_v56  ;;  %827 = vst [vmem:[%s238_s15] sm:$0xff] %v712_v56 }
 0x137   : > { %829 = vst [vmem:[%s247_s20] sm:$0xff] %v806_v57 }
 0x138   : > { %v809_v61 = vrot.slane %v808_v59, 4  ;;  %v817_v62 = vadd.f32 %v816_v58, %v815_v60 }
 0x13a   : > { %v810_v63 = vadd.f32 %v809_v61, %v808_v59  ;;  %v818_v0 = vrot.slane %v817_v62, 4 }
 0x13c   : > { %v811_v1 = vrot.slane %v810_v63, 2  ;;  %v819_v2 = vadd.f32 %v818_v0, %v817_v62 }
 0x13e   : > { %v812_v3 = vadd.f32 %v811_v1, %v810_v63  ;;  %v820_v4 = vrot.slane %v819_v2, 2 }
 0x140   : > { %v813_v5 = vrot.slane %v812_v3, 1  ;;  %v821_v6 = vadd.f32 %v820_v4, %v819_v2 }
 0x142   : > { %v822_v7 = vrot.slane %v821_v6, 1  ;;  %v814_v8 = vadd.f32 %v813_v5, %v812_v3 }
 0x144   : > { %v823_v9 = vadd.f32 %v822_v7, %v821_v6 }
 0x146   : > { %v825_v10 = vsel %vm824_vm0, %v814_v8, %v823_v9 }
 0x147   : > { %826 = vst [vmem:[%s242_s24] sm:$0x3] %v825_v10 }
 0x148 PF: > { %s16_s18 = sadd.s32 1, %s1362_s18  }
 0x149   : > { %p13_p4 = scmp.ge.s32.totalorder %s16_s18, 4  }
 0x14b   :  { %15 = sbr.rel (!%p13_p4) target bundleno = 1 (0x1), region = 90 }

</bundles_post_ra>
